<compile_context>
chip_gen: v7x
topology: tpu7x:2x2x1
jax: 0.10.0
libtpu: 0.0.40
codegen_flags: <defaults>
</compile_context>

<pallas_src>
import jax
import jax.numpy as jnp
from jax import lax
from jax.experimental import pallas as pl
from jax.experimental.pallas import tpu as pltpu

BN_EPS = 1e-5


def _round_up(x, m):
    return (x + m - 1) // m * m


# ----------------------------- Pallas kernels ------------------------------

def _fused_conv_bn_relu_kernel(x_ref, w_ref, scale_ref, bias_ref, o_ref):
    """o = relu((x @ w) * scale + bias); bf16 operands, f32 accumulation."""
    acc = jnp.dot(x_ref[...], w_ref[...], preferred_element_type=jnp.float32)
    acc = acc * scale_ref[...] + bias_ref[...]       # f32 epilogue (VPU)
    acc = jnp.maximum(acc, 0.0)
    o_ref[...] = acc.astype(o_ref.dtype)


def _maxpool3x3s2_kernel(x_ref, o_ref):
    """3x3 / stride-2 max pool on an already (zero-)padded NHWC block.

    x_ref: (1, Hpad, Wpad, C)  bf16 (post-ReLU, so zero pad == -inf pad)
    o_ref: (1, Hp,   Wp,   C)  f32
    Unrolled over the (small) pooled spatial extent; uses only static,
    unstrided slices + elementwise max + concatenate.
    """
    hp, wp = o_ref.shape[1], o_ref.shape[2]
    for i in range(hp):
        h0 = 2 * i
        r = jnp.maximum(
            jnp.maximum(x_ref[:, h0:h0 + 1, :, :].astype(jnp.float32),
                        x_ref[:, h0 + 1:h0 + 2, :, :].astype(jnp.float32)),
            x_ref[:, h0 + 2:h0 + 3, :, :].astype(jnp.float32))        # (1,1,Wpad,C)
        cols = []
        for j in range(wp):
            w0 = 2 * j
            cols.append(jnp.maximum(
                jnp.maximum(r[:, :, w0:w0 + 1, :], r[:, :, w0 + 1:w0 + 2, :]),
                r[:, :, w0 + 2:w0 + 3, :]))                           # (1,1,1,C)
        o_ref[:, i:i + 1, :, :] = jnp.concatenate(cols, axis=2)       # (1,1,wp,C)


# ------------------------------ Pallas wrappers -----------------------------

def fused_conv_bn_relu_matmul(x2d, w2d, scale, bias, *, tm=256):
    """relu((x2d @ w2d) * scale + bias) via a tiled Pallas MXU kernel.

    Returns a (M, Cp) bf16 array where Cp = round_up(Cout, 128) (lane-dense
    output; caller slices the channel padding off later).
    """
    M, K = x2d.shape
    Kw, C = w2d.shape
    assert K == Kw, (K, Kw)

    # Lane-dense output channels (multiple of 128).
    Cp = _round_up(C, 128)
    if Cp != C:
        w2d = jnp.pad(w2d, ((0, 0), (0, Cp - C)))
        scale = jnp.pad(scale, (0, Cp - C))
        bias = jnp.pad(bias, (0, Cp - C))

    # Row tiling: cdiv grid with zero padding (never collapse to one huge block).
    tm = min(tm, _round_up(M, 128))
    Mp = _round_up(M, tm)
    if Mp != M:
        x2d = jnp.pad(x2d, ((0, Mp - M), (0, 0)))
    grid = (Mp // tm,)

    x_bf = x2d.astype(jnp.bfloat16)
    w_bf = w2d.astype(jnp.bfloat16)
    scale2d = scale.reshape(1, Cp).astype(jnp.float32)
    bias2d = bias.reshape(1, Cp).astype(jnp.float32)

    cost = pl.CostEstimate(
        flops=2 * Mp * K * Cp,
        transcendentals=0,
        bytes_accessed=Mp * K * 2 + K * Cp * 2 + 2 * Cp * 4 + Mp * Cp * 2,
    )

    out = pl.pallas_call(
        _fused_conv_bn_relu_kernel,
        out_shape=jax.ShapeDtypeStruct((Mp, Cp), jnp.bfloat16),
        grid_spec=pltpu.PrefetchScalarGridSpec(
            num_scalar_prefetch=0,
            grid=grid,
            in_specs=[
                pl.BlockSpec((tm, K), lambda i: (i, 0)),   # patches row tile
                pl.BlockSpec((K, Cp), lambda i: (0, 0)),   # full weight (K=147 tiny)
                pl.BlockSpec((1, Cp), lambda i: (0, 0)),   # folded BN scale
                pl.BlockSpec((1, Cp), lambda i: (0, 0)),   # folded BN bias
            ],
            out_specs=pl.BlockSpec((tm, Cp), lambda i: (i, 0)),
        ),
        compiler_params=pltpu.CompilerParams(
            dimension_semantics=("parallel",),
            vmem_limit_bytes=64 * 1024 * 1024,
        ),
        cost_estimate=cost,
    )(x_bf, w_bf, scale2d, bias2d)
    return out[:M, :]   # keep padded channels; caller slices after the pool


def maxpool_3x3_s2_p1(x_nhwc):
    """F.max_pool2d(kernel=3, stride=2, padding=1) on NHWC via a Pallas kernel."""
    N, Ho, Wo, C = x_nhwc.shape
    Hp = (Ho + 2 - 3) // 2 + 1
    Wp = (Wo + 2 - 3) // 2 + 1
    # Zero padding is equivalent to -inf padding here because the input is
    # post-ReLU (non-negative).
    xp = jnp.pad(x_nhwc, ((0, 0), (1, 1), (1, 1), (0, 0)))
    Hpad, Wpad = Ho + 2, Wo + 2

    return pl.pallas_call(
        _maxpool3x3s2_kernel,
        out_shape=jax.ShapeDtypeStruct((N, Hp, Wp, C), jnp.float32),
        grid_spec=pltpu.PrefetchScalarGridSpec(
            num_scalar_prefetch=0,
            grid=(N,),
            in_specs=[pl.BlockSpec((1, Hpad, Wpad, C), lambda n: (n, 0, 0, 0))],
            out_specs=pl.BlockSpec((1, Hp, Wp, C), lambda n: (n, 0, 0, 0)),
        ),
        compiler_params=pltpu.CompilerParams(
            dimension_semantics=("parallel",),
        ),
    )(xp)


# ------------------------------- JAX glue ----------------------------------

def im2col_nhwc(x, kh, kw, stride, dilation, pad):
    """x: (N,H,W,C) -> patches (N,Ho,Wo, kh*kw*C) with (ky,kx,ci) ordering."""
    x_p = jnp.pad(x, ((0, 0), (pad, pad), (pad, pad), (0, 0)))
    N, Hp, Wp, C = x_p.shape
    Ho = (Hp - dilation * (kh - 1) - 1) // stride + 1
    Wo = (Wp - dilation * (kw - 1) - 1) // stride + 1
    cols = []
    for ky in range(kh):
        for kx in range(kw):
            sl = x_p[:,
                     ky * dilation: ky * dilation + stride * (Ho - 1) + 1: stride,
                     kx * dilation: kx * dilation + stride * (Wo - 1) + 1: stride,
                     :]
            cols.append(sl)
    return jnp.concatenate(cols, axis=-1), Ho, Wo


def fold_bn(gamma, beta, running_mean, running_var):
    scale = gamma / jnp.sqrt(running_var + BN_EPS)
    bias = beta - running_mean * scale
    return scale, bias


def torch_oihw_to_mat(w):
    """(Cout,Cin,KH,KW) -> (KH*KW*Cin, Cout) matching im2col ordering."""
    co, ci, kh, kw = w.shape
    return jnp.transpose(w, (2, 3, 1, 0)).reshape(kh * kw * ci, co)


def init_stem(key, out_channels):
    keys = jax.random.split(key, 5)
    p = {}
    p["conv1_w"] = 0.1 * jax.random.normal(keys[0], (out_channels, 3, 7, 7), jnp.float32)
    p["bn1_gamma"] = 1.0 + 0.1 * jax.random.normal(keys[1], (out_channels,), jnp.float32)
    p["bn1_beta"] = 0.1 * jax.random.normal(keys[2], (out_channels,), jnp.float32)
    p["bn1_mean"] = 0.1 * jax.random.normal(keys[3], (out_channels,), jnp.float32)
    p["bn1_var"] = 0.5 + jnp.abs(jax.random.normal(keys[4], (out_channels,), jnp.float32))
    return p


def stem_forward(params, x_nchw):
    N, Cin, H, W = x_nchw.shape
    Cout = params["conv1_w"].shape[0]
    x = jnp.transpose(x_nchw, (0, 2, 3, 1)).astype(jnp.bfloat16)   # NHWC, bf16 operands

    # conv1 (7x7, stride 2, pad 3) + folded BN + ReLU, fused in one Pallas matmul.
    patches, Ho, Wo = im2col_nhwc(x, 7, 7, stride=2, dilation=1, pad=3)
    p2d = patches.reshape(N * Ho * Wo, -1)
    scale, bias = fold_bn(params["bn1_gamma"], params["bn1_beta"],
                          params["bn1_mean"], params["bn1_var"])
    y = fused_conv_bn_relu_matmul(p2d, torch_oihw_to_mat(params["conv1_w"]),
                                  scale, bias)
    Cp = y.shape[1]                              # lane-padded channels (mult of 128)
    y_nhwc = y.reshape(N, Ho, Wo, Cp)

    # max_pool2d(kernel=3, stride=2, padding=1) as a Pallas kernel.
    pooled = maxpool_3x3_s2_p1(y_nhwc)           # (N, Hp, Wp, Cp) f32
    pooled = pooled[..., :Cout]                  # drop lane padding
    return jnp.transpose(pooled, (0, 3, 1, 2)).astype(jnp.float32)   # back to NCHW


# ------------------------- pure-JAX reference check -------------------------

def reference_forward(params, x_nchw):
    x = jnp.transpose(x_nchw, (0, 2, 3, 1)).astype(jnp.float32)
    # Match kernel numerics: bf16-rounded conv operands, f32 accumulation.
    xb = x.astype(jnp.bfloat16).astype(jnp.float32)
    wb = params["conv1_w"].astype(jnp.bfloat16).astype(jnp.float32)
    out = lax.conv_general_dilated(
        xb, jnp.transpose(wb, (2, 3, 1, 0)), (2, 2), [(3, 3), (3, 3)],
        dimension_numbers=("NHWC", "HWIO", "NHWC"))
    scale, bias = fold_bn(params["bn1_gamma"], params["bn1_beta"],
                          params["bn1_mean"], params["bn1_var"])
    out = jax.nn.relu(out * scale + bias)
    out = lax.reduce_window(out, -jnp.inf, lax.max,
                            window_dimensions=(1, 3, 3, 1),
                            window_strides=(1, 2, 2, 1),
                            padding=[(0, 0), (1, 1), (1, 1), (0, 0)])
    return jnp.transpose(out, (0, 3, 1, 2))


# ---------------------------------- main ------------------------------------

if __name__ == "__main__":
    key = jax.random.PRNGKey(0)
    k_param, k_x = jax.random.split(key)

    out_channels = 8
    x = jax.random.normal(k_x, (2, 3, 32, 32), jnp.float32)   # NCHW, Cin=3 per Stem

    params = init_stem(k_param, out_channels)

    fwd = jax.jit(lambda inp: stem_forward(params, inp))
    out = jax.block_until_ready(fwd(x))

    ref = jax.block_until_ready(reference_forward(params, x))
    assert out.shape == ref.shape, (out.shape, ref.shape)
    err = float(jnp.max(jnp.abs(out - ref)))
    assert jnp.allclose(out, ref, rtol=2e-2, atol=2e-2), err

    print("KERNEL_OK")
</pallas_src>

<mosaic_0001>
module attributes {stable_mosaic.version = 11 : i64} {
  func.func @_fused_conv_bn_relu_kernel(%arg0: i32, %arg1: memref<256x147xbf16, #tpu.memory_space<vmem>>, %arg2: memref<147x128xbf16, #tpu.memory_space<vmem>>, %arg3: memref<1x128xf32, #tpu.memory_space<vmem>>, %arg4: memref<1x128xf32, #tpu.memory_space<vmem>>, %arg5: memref<256x128xbf16, #tpu.memory_space<vmem>>) attributes {dimension_semantics = [#tpu.dimension_semantics<parallel>], iteration_bounds = array<i64: 2>, scalar_prefetch = 0 : i64, scratch_operands = 0 : i64, tpu.core_type = #tpu.core_type<tc>, window_params = [{transform_indices = @transform_0, window_bounds = array<i64: 256, 147>}, {pipeline_mode = #tpu.pipeline_mode<synchronous>, transform_indices = @transform_1, window_bounds = array<i64: 147, 128>}, {pipeline_mode = #tpu.pipeline_mode<synchronous>, transform_indices = @transform_2, window_bounds = array<i64: 1, 128>}, {pipeline_mode = #tpu.pipeline_mode<synchronous>, transform_indices = @transform_3, window_bounds = array<i64: 1, 128>}, {transform_indices = @transform_4, window_bounds = array<i64: 256, 128>}]} {
    %c0 = arith.constant 0 : index
    %c0_0 = arith.constant 0 : index
    %0 = vector.load %arg1[%c0, %c0_0] : memref<256x147xbf16, #tpu.memory_space<vmem>>, vector<256x147xbf16>
    %c0_1 = arith.constant 0 : index
    %c0_2 = arith.constant 0 : index
    %1 = vector.load %arg2[%c0_1, %c0_2] : memref<147x128xbf16, #tpu.memory_space<vmem>>, vector<147x128xbf16>
    %cst = arith.constant dense<0.000000e+00> : vector<256x128xf32>
    %2 = tpu.matmul %0, %1, %cst {dimension_numbers = #tpu.dot_dimension_numbers<[1], [0], [0], [1], [0, 0, 1, 1], [], []>} : vector<256x147xbf16>, vector<147x128xbf16>, vector<256x128xf32> -> vector<256x128xf32>
    %c0_3 = arith.constant 0 : index
    %c0_4 = arith.constant 0 : index
    %3 = vector.load %arg3[%c0_3, %c0_4] : memref<1x128xf32, #tpu.memory_space<vmem>>, vector<1x128xf32>
    %4 = vector.broadcast %3 : vector<1x128xf32> to vector<256x128xf32>
    %5 = arith.mulf %2, %4 : vector<256x128xf32>
    %c0_5 = arith.constant 0 : index
    %c0_6 = arith.constant 0 : index
    %6 = vector.load %arg4[%c0_5, %c0_6] : memref<1x128xf32, #tpu.memory_space<vmem>>, vector<1x128xf32>
    %7 = vector.broadcast %6 : vector<1x128xf32> to vector<256x128xf32>
    %8 = arith.addf %5, %7 : vector<256x128xf32>
    %cst_7 = arith.constant 0.000000e+00 : f32
    %9 = vector.broadcast %cst_7 : f32 to vector<256x128xf32>
    %10 = arith.maximumf %8, %9 : vector<256x128xf32>
    %11 = arith.truncf %10 : vector<256x128xf32> to vector<256x128xbf16>
    %c0_8 = arith.constant 0 : index
    %c0_9 = arith.constant 0 : index
    %12 = vector.load %arg5[%c0_8, %c0_9] : memref<256x128xbf16, #tpu.memory_space<vmem>>, vector<256x128xbf16>
    tpu.vector_store %arg5[%c0_8, %c0_9], %11 {strides = array<i32>} : memref<256x128xbf16, #tpu.memory_space<vmem>>, vector<256x128xbf16>,
    return
  }
  func.func @transform_0(%arg0: i32) -> (i32, i32) {
    %c0_i32 = arith.constant 0 : i32
    %c0_i32_0 = arith.constant 0 : i32
    return %arg0, %c0_i32 : i32, i32
  }
  func.func @transform_1(%arg0: i32) -> (i32, i32) {
    %c0_i32 = arith.constant 0 : i32
    %c0_i32_0 = arith.constant 0 : i32
    %c0_i32_1 = arith.constant 0 : i32
    return %c0_i32, %c0_i32_0 : i32, i32
  }
  func.func @transform_2(%arg0: i32) -> (i32, i32) {
    %c0_i32 = arith.constant 0 : i32
    %c0_i32_0 = arith.constant 0 : i32
    %c0_i32_1 = arith.constant 0 : i32
    return %c0_i32, %c0_i32_0 : i32, i32
  }
  func.func @transform_3(%arg0: i32) -> (i32, i32) {
    %c0_i32 = arith.constant 0 : i32
    %c0_i32_0 = arith.constant 0 : i32
    %c0_i32_1 = arith.constant 0 : i32
    return %c0_i32, %c0_i32_0 : i32, i32
  }
  func.func @transform_4(%arg0: i32) -> (i32, i32) {
    %c0_i32 = arith.constant 0 : i32
    %c0_i32_0 = arith.constant 0 : i32
    return %arg0, %c0_i32 : i32, i32
  }
}

module attributes {stable_mosaic.version = 11 : i64} {
  func.func @_maxpool3x3s2_kernel(%arg0: i32, %arg1: memref<1x18x18x128xbf16, #tpu.memory_space<vmem>>, %arg2: memref<1x8x8x128xf32, #tpu.memory_space<vmem>>) attributes {dimension_semantics = [#tpu.dimension_semantics<parallel>], iteration_bounds = array<i64: 2>, scalar_prefetch = 0 : i64, scratch_operands = 0 : i64, tpu.core_type = #tpu.core_type<tc>, window_params = [{transform_indices = @transform_0, window_bounds = array<i64: 1, 18, 18, 128>}, {transform_indices = @transform_1, window_bounds = array<i64: 1, 8, 8, 128>}]} {
    %c0 = arith.constant 0 : index
    %c0_0 = arith.constant 0 : index
    %c0_1 = arith.constant 0 : index
    %c0_2 = arith.constant 0 : index
    %0 = vector.load %arg1[%c0, %c0_0, %c0_1, %c0_2] : memref<1x18x18x128xbf16, #tpu.memory_space<vmem>>, vector<1x1x18x128xbf16>
    %1 = arith.extf %0 : vector<1x1x18x128xbf16> to vector<1x1x18x128xf32>
    %c0_3 = arith.constant 0 : index
    %c1 = arith.constant 1 : index
    %c0_4 = arith.constant 0 : index
    %c0_5 = arith.constant 0 : index
    %2 = vector.load %arg1[%c0_3, %c1, %c0_4, %c0_5] : memref<1x18x18x128xbf16, #tpu.memory_space<vmem>>, vector<1x1x18x128xbf16>
    %3 = arith.extf %2 : vector<1x1x18x128xbf16> to vector<1x1x18x128xf32>
    %4 = arith.maximumf %1, %3 : vector<1x1x18x128xf32>
    %c0_6 = arith.constant 0 : index
    %c2 = arith.constant 2 : index
    %c0_7 = arith.constant 0 : index
    %c0_8 = arith.constant 0 : index
    %5 = vector.load %arg1[%c0_6, %c2, %c0_7, %c0_8] : memref<1x18x18x128xbf16, #tpu.memory_space<vmem>>, vector<1x1x18x128xbf16>
    %6 = arith.extf %5 : vector<1x1x18x128xbf16> to vector<1x1x18x128xf32>
    %7 = arith.maximumf %4, %6 : vector<1x1x18x128xf32>
    %8 = vector.extract_strided_slice %7 {offsets = [0, 0, 0, 0], sizes = [1, 1, 1, 128], strides = [1, 1, 1, 1]} : vector<1x1x18x128xf32> to vector<1x1x1x128xf32>
    %9 = vector.extract_strided_slice %7 {offsets = [0, 0, 1, 0], sizes = [1, 1, 1, 128], strides = [1, 1, 1, 1]} : vector<1x1x18x128xf32> to vector<1x1x1x128xf32>
    %10 = arith.maximumf %8, %9 : vector<1x1x1x128xf32>
    %11 = vector.extract_strided_slice %7 {offsets = [0, 0, 2, 0], sizes = [1, 1, 1, 128], strides = [1, 1, 1, 1]} : vector<1x1x18x128xf32> to vector<1x1x1x128xf32>
    %12 = arith.maximumf %10, %11 : vector<1x1x1x128xf32>
    %13 = vector.extract_strided_slice %7 {offsets = [0, 0, 2, 0], sizes = [1, 1, 1, 128], strides = [1, 1, 1, 1]} : vector<1x1x18x128xf32> to vector<1x1x1x128xf32>
    %14 = vector.extract_strided_slice %7 {offsets = [0, 0, 3, 0], sizes = [1, 1, 1, 128], strides = [1, 1, 1, 1]} : vector<1x1x18x128xf32> to vector<1x1x1x128xf32>
    %15 = arith.maximumf %13, %14 : vector<1x1x1x128xf32>
    %16 = vector.extract_strided_slice %7 {offsets = [0, 0, 4, 0], sizes = [1, 1, 1, 128], strides = [1, 1, 1, 1]} : vector<1x1x18x128xf32> to vector<1x1x1x128xf32>
    %17 = arith.maximumf %15, %16 : vector<1x1x1x128xf32>
    %18 = vector.extract_strided_slice %7 {offsets = [0, 0, 4, 0], sizes = [1, 1, 1, 128], strides = [1, 1, 1, 1]} : vector<1x1x18x128xf32> to vector<1x1x1x128xf32>
    %19 = vector.extract_strided_slice %7 {offsets = [0, 0, 5, 0], sizes = [1, 1, 1, 128], strides = [1, 1, 1, 1]} : vector<1x1x18x128xf32> to vector<1x1x1x128xf32>
    %20 = arith.maximumf %18, %19 : vector<1x1x1x128xf32>
    %21 = vector.extract_strided_slice %7 {offsets = [0, 0, 6, 0], sizes = [1, 1, 1, 128], strides = [1, 1, 1, 1]} : vector<1x1x18x128xf32> to vector<1x1x1x128xf32>
    %22 = arith.maximumf %20, %21 : vector<1x1x1x128xf32>
    %23 = vector.extract_strided_slice %7 {offsets = [0, 0, 6, 0], sizes = [1, 1, 1, 128], strides = [1, 1, 1, 1]} : vector<1x1x18x128xf32> to vector<1x1x1x128xf32>
    %24 = vector.extract_strided_slice %7 {offsets = [0, 0, 7, 0], sizes = [1, 1, 1, 128], strides = [1, 1, 1, 1]} : vector<1x1x18x128xf32> to vector<1x1x1x128xf32>
    %25 = arith.maximumf %23, %24 : vector<1x1x1x128xf32>
    %26 = vector.extract_strided_slice %7 {offsets = [0, 0, 8, 0], sizes = [1, 1, 1, 128], strides = [1, 1, 1, 1]} : vector<1x1x18x128xf32> to vector<1x1x1x128xf32>
    %27 = arith.maximumf %25, %26 : vector<1x1x1x128xf32>
    %28 = vector.extract_strided_slice %7 {offsets = [0, 0, 8, 0], sizes = [1, 1, 1, 128], strides = [1, 1, 1, 1]} : vector<1x1x18x128xf32> to vector<1x1x1x128xf32>
    %29 = vector.extract_strided_slice %7 {offsets = [0, 0, 9, 0], sizes = [1, 1, 1, 128], strides = [1, 1, 1, 1]} : vector<1x1x18x128xf32> to vector<1x1x1x128xf32>
    %30 = arith.maximumf %28, %29 : vector<1x1x1x128xf32>
    %31 = vector.extract_strided_slice %7 {offsets = [0, 0, 10, 0], sizes = [1, 1, 1, 128], strides = [1, 1, 1, 1]} : vector<1x1x18x128xf32> to vector<1x1x1x128xf32>
    %32 = arith.maximumf %30, %31 : vector<1x1x1x128xf32>
    %33 = vector.extract_strided_slice %7 {offsets = [0, 0, 10, 0], sizes = [1, 1, 1, 128], strides = [1, 1, 1, 1]} : vector<1x1x18x128xf32> to vector<1x1x1x128xf32>
    %34 = vector.extract_strided_slice %7 {offsets = [0, 0, 11, 0], sizes = [1, 1, 1, 128], strides = [1, 1, 1, 1]} : vector<1x1x18x128xf32> to vector<1x1x1x128xf32>
    %35 = arith.maximumf %33, %34 : vector<1x1x1x128xf32>
    %36 = vector.extract_strided_slice %7 {offsets = [0, 0, 12, 0], sizes = [1, 1, 1, 128], strides = [1, 1, 1, 1]} : vector<1x1x18x128xf32> to vector<1x1x1x128xf32>
    %37 = arith.maximumf %35, %36 : vector<1x1x1x128xf32>
    %38 = vector.extract_strided_slice %7 {offsets = [0, 0, 12, 0], sizes = [1, 1, 1, 128], strides = [1, 1, 1, 1]} : vector<1x1x18x128xf32> to vector<1x1x1x128xf32>
    %39 = vector.extract_strided_slice %7 {offsets = [0, 0, 13, 0], sizes = [1, 1, 1, 128], strides = [1, 1, 1, 1]} : vector<1x1x18x128xf32> to vector<1x1x1x128xf32>
    %40 = arith.maximumf %38, %39 : vector<1x1x1x128xf32>
    %41 = vector.extract_strided_slice %7 {offsets = [0, 0, 14, 0], sizes = [1, 1, 1, 128], strides = [1, 1, 1, 1]} : vector<1x1x18x128xf32> to vector<1x1x1x128xf32>
    %42 = arith.maximumf %40, %41 : vector<1x1x1x128xf32>
    %43 = vector.extract_strided_slice %7 {offsets = [0, 0, 14, 0], sizes = [1, 1, 1, 128], strides = [1, 1, 1, 1]} : vector<1x1x18x128xf32> to vector<1x1x1x128xf32>
    %44 = vector.extract_strided_slice %7 {offsets = [0, 0, 15, 0], sizes = [1, 1, 1, 128], strides = [1, 1, 1, 1]} : vector<1x1x18x128xf32> to vector<1x1x1x128xf32>
    %45 = arith.maximumf %43, %44 : vector<1x1x1x128xf32>
    %46 = vector.extract_strided_slice %7 {offsets = [0, 0, 16, 0], sizes = [1, 1, 1, 128], strides = [1, 1, 1, 1]} : vector<1x1x18x128xf32> to vector<1x1x1x128xf32>
    %47 = arith.maximumf %45, %46 : vector<1x1x1x128xf32>
    %48 = tpu.concatenate %12, %17, %22, %27, %32, %37, %42, %47 in 2 : vector<1x1x1x128xf32>, vector<1x1x1x128xf32>, vector<1x1x1x128xf32>, vector<1x1x1x128xf32>, vector<1x1x1x128xf32>, vector<1x1x1x128xf32>, vector<1x1x1x128xf32>, vector<1x1x1x128xf32> -> vector<1x1x8x128xf32>
    %c0_9 = arith.constant 0 : index
    %c0_10 = arith.constant 0 : index
    %c0_11 = arith.constant 0 : index
    %c0_12 = arith.constant 0 : index
    %49 = vector.load %arg2[%c0_9, %c0_10, %c0_11, %c0_12] : memref<1x8x8x128xf32, #tpu.memory_space<vmem>>, vector<1x1x8x128xf32>
    tpu.vector_store %arg2[%c0_9, %c0_10, %c0_11, %c0_12], %48 {strides = array<i32>} : memref<1x8x8x128xf32, #tpu.memory_space<vmem>>, vector<1x1x8x128xf32>,
    %c0_13 = arith.constant 0 : index
    %c2_14 = arith.constant 2 : index
    %c0_15 = arith.constant 0 : index
    %c0_16 = arith.constant 0 : index
    %50 = vector.load %arg1[%c0_13, %c2_14, %c0_15, %c0_16] : memref<1x18x18x128xbf16, #tpu.memory_space<vmem>>, vector<1x1x18x128xbf16>
    %51 = arith.extf %50 : vector<1x1x18x128xbf16> to vector<1x1x18x128xf32>
    %c0_17 = arith.constant 0 : index
    %c3 = arith.constant 3 : index
    %c0_18 = arith.constant 0 : index
    %c0_19 = arith.constant 0 : index
    %52 = vector.load %arg1[%c0_17, %c3, %c0_18, %c0_19] : memref<1x18x18x128xbf16, #tpu.memory_space<vmem>>, vector<1x1x18x128xbf16>
    %53 = arith.extf %52 : vector<1x1x18x128xbf16> to vector<1x1x18x128xf32>
    %54 = arith.maximumf %51, %53 : vector<1x1x18x128xf32>
    %c0_20 = arith.constant 0 : index
    %c4 = arith.constant 4 : index
    %c0_21 = arith.constant 0 : index
    %c0_22 = arith.constant 0 : index
    %55 = vector.load %arg1[%c0_20, %c4, %c0_21, %c0_22] : memref<1x18x18x128xbf16, #tpu.memory_space<vmem>>, vector<1x1x18x128xbf16>
    %56 = arith.extf %55 : vector<1x1x18x128xbf16> to vector<1x1x18x128xf32>
    %57 = arith.maximumf %54, %56 : vector<1x1x18x128xf32>
    %58 = vector.extract_strided_slice %57 {offsets = [0, 0, 0, 0], sizes = [1, 1, 1, 128], strides = [1, 1, 1, 1]} : vector<1x1x18x128xf32> to vector<1x1x1x128xf32>
    %59 = vector.extract_strided_slice %57 {offsets = [0, 0, 1, 0], sizes = [1, 1, 1, 128], strides = [1, 1, 1, 1]} : vector<1x1x18x128xf32> to vector<1x1x1x128xf32>
    %60 = arith.maximumf %58, %59 : vector<1x1x1x128xf32>
    %61 = vector.extract_strided_slice %57 {offsets = [0, 0, 2, 0], sizes = [1, 1, 1, 128], strides = [1, 1, 1, 1]} : vector<1x1x18x128xf32> to vector<1x1x1x128xf32>
    %62 = arith.maximumf %60, %61 : vector<1x1x1x128xf32>
    %63 = vector.extract_strided_slice %57 {offsets = [0, 0, 2, 0], sizes = [1, 1, 1, 128], strides = [1, 1, 1, 1]} : vector<1x1x18x128xf32> to vector<1x1x1x128xf32>
    %64 = vector.extract_strided_slice %57 {offsets = [0, 0, 3, 0], sizes = [1, 1, 1, 128], strides = [1, 1, 1, 1]} : vector<1x1x18x128xf32> to vector<1x1x1x128xf32>
    %65 = arith.maximumf %63, %64 : vector<1x1x1x128xf32>
    %66 = vector.extract_strided_slice %57 {offsets = [0, 0, 4, 0], sizes = [1, 1, 1, 128], strides = [1, 1, 1, 1]} : vector<1x1x18x128xf32> to vector<1x1x1x128xf32>
    %67 = arith.maximumf %65, %66 : vector<1x1x1x128xf32>
    %68 = vector.extract_strided_slice %57 {offsets = [0, 0, 4, 0], sizes = [1, 1, 1, 128], strides = [1, 1, 1, 1]} : vector<1x1x18x128xf32> to vector<1x1x1x128xf32>
    %69 = vector.extract_strided_slice %57 {offsets = [0, 0, 5, 0], sizes = [1, 1, 1, 128], strides = [1, 1, 1, 1]} : vector<1x1x18x128xf32> to vector<1x1x1x128xf32>
    %70 = arith.maximumf %68, %69 : vector<1x1x1x128xf32>
    %71 = vector.extract_strided_slice %57 {offsets = [0, 0, 6, 0], sizes = [1, 1, 1, 128], strides = [1, 1, 1, 1]} : vector<1x1x18x128xf32> to vector<1x1x1x128xf32>
    %72 = arith.maximumf %70, %71 : vector<1x1x1x128xf32>
    %73 = vector.extract_strided_slice %57 {offsets = [0, 0, 6, 0], sizes = [1, 1, 1, 128], strides = [1, 1, 1, 1]} : vector<1x1x18x128xf32> to vector<1x1x1x128xf32>
    %74 = vector.extract_strided_slice %57 {offsets = [0, 0, 7, 0], sizes = [1, 1, 1, 128], strides = [1, 1, 1, 1]} : vector<1x1x18x128xf32> to vector<1x1x1x128xf32>
    %75 = arith.maximumf %73, %74 : vector<1x1x1x128xf32>
    %76 = vector.extract_strided_slice %57 {offsets = [0, 0, 8, 0], sizes = [1, 1, 1, 128], strides = [1, 1, 1, 1]} : vector<1x1x18x128xf32> to vector<1x1x1x128xf32>
    %77 = arith.maximumf %75, %76 : vector<1x1x1x128xf32>
    %78 = vector.extract_strided_slice %57 {offsets = [0, 0, 8, 0], sizes = [1, 1, 1, 128], strides = [1, 1, 1, 1]} : vector<1x1x18x128xf32> to vector<1x1x1x128xf32>
    %79 = vector.extract_strided_slice %57 {offsets = [0, 0, 9, 0], sizes = [1, 1, 1, 128], strides = [1, 1, 1, 1]} : vector<1x1x18x128xf32> to vector<1x1x1x128xf32>
    %80 = arith.maximumf %78, %79 : vector<1x1x1x128xf32>
    %81 = vector.extract_strided_slice %57 {offsets = [0, 0, 10, 0], sizes = [1, 1, 1, 128], strides = [1, 1, 1, 1]} : vector<1x1x18x128xf32> to vector<1x1x1x128xf32>
    %82 = arith.maximumf %80, %81 : vector<1x1x1x128xf32>
    %83 = vector.extract_strided_slice %57 {offsets = [0, 0, 10, 0], sizes = [1, 1, 1, 128], strides = [1, 1, 1, 1]} : vector<1x1x18x128xf32> to vector<1x1x1x128xf32>
    %84 = vector.extract_strided_slice %57 {offsets = [0, 0, 11, 0], sizes = [1, 1, 1, 128], strides = [1, 1, 1, 1]} : vector<1x1x18x128xf32> to vector<1x1x1x128xf32>
    %85 = arith.maximumf %83, %84 : vector<1x1x1x128xf32>
    %86 = vector.extract_strided_slice %57 {offsets = [0, 0, 12, 0], sizes = [1, 1, 1, 128], strides = [1, 1, 1, 1]} : vector<1x1x18x128xf32> to vector<1x1x1x128xf32>
    %87 = arith.maximumf %85, %86 : vector<1x1x1x128xf32>
    %88 = vector.extract_strided_slice %57 {offsets = [0, 0, 12, 0], sizes = [1, 1, 1, 128], strides = [1, 1, 1, 1]} : vector<1x1x18x128xf32> to vector<1x1x1x128xf32>
    %89 = vector.extract_strided_slice %57 {offsets = [0, 0, 13, 0], sizes = [1, 1, 1, 128], strides = [1, 1, 1, 1]} : vector<1x1x18x128xf32> to vector<1x1x1x128xf32>
    %90 = arith.maximumf %88, %89 : vector<1x1x1x128xf32>
    %91 = vector.extract_strided_slice %57 {offsets = [0, 0, 14, 0], sizes = [1, 1, 1, 128], strides = [1, 1, 1, 1]} : vector<1x1x18x128xf32> to vector<1x1x1x128xf32>
    %92 = arith.maximumf %90, %91 : vector<1x1x1x128xf32>
    %93 = vector.extract_strided_slice %57 {offsets = [0, 0, 14, 0], sizes = [1, 1, 1, 128], strides = [1, 1, 1, 1]} : vector<1x1x18x128xf32> to vector<1x1x1x128xf32>
    %94 = vector.extract_strided_slice %57 {offsets = [0, 0, 15, 0], sizes = [1, 1, 1, 128], strides = [1, 1, 1, 1]} : vector<1x1x18x128xf32> to vector<1x1x1x128xf32>
    %95 = arith.maximumf %93, %94 : vector<1x1x1x128xf32>
    %96 = vector.extract_strided_slice %57 {offsets = [0, 0, 16, 0], sizes = [1, 1, 1, 128], strides = [1, 1, 1, 1]} : vector<1x1x18x128xf32> to vector<1x1x1x128xf32>
    %97 = arith.maximumf %95, %96 : vector<1x1x1x128xf32>
    %98 = tpu.concatenate %62, %67, %72, %77, %82, %87, %92, %97 in 2 : vector<1x1x1x128xf32>, vector<1x1x1x128xf32>, vector<1x1x1x128xf32>, vector<1x1x1x128xf32>, vector<1x1x1x128xf32>, vector<1x1x1x128xf32>, vector<1x1x1x128xf32>, vector<1x1x1x128xf32> -> vector<1x1x8x128xf32>
    %c0_23 = arith.constant 0 : index
    %c1_24 = arith.constant 1 : index
    %c0_25 = arith.constant 0 : index
    %c0_26 = arith.constant 0 : index
    %99 = vector.load %arg2[%c0_23, %c1_24, %c0_25, %c0_26] : memref<1x8x8x128xf32, #tpu.memory_space<vmem>>, vector<1x1x8x128xf32>
    tpu.vector_store %arg2[%c0_23, %c1_24, %c0_25, %c0_26], %98 {strides = array<i32>} : memref<1x8x8x128xf32, #tpu.memory_space<vmem>>, vector<1x1x8x128xf32>,
    %c0_27 = arith.constant 0 : index
    %c4_28 = arith.constant 4 : index
    %c0_29 = arith.constant 0 : index
    %c0_30 = arith.constant 0 : index
    %100 = vector.load %arg1[%c0_27, %c4_28, %c0_29, %c0_30] : memref<1x18x18x128xbf16, #tpu.memory_space<vmem>>, vector<1x1x18x128xbf16>
    %101 = arith.extf %100 : vector<1x1x18x128xbf16> to vector<1x1x18x128xf32>
    %c0_31 = arith.constant 0 : index
    %c5 = arith.constant 5 : index
    %c0_32 = arith.constant 0 : index
    %c0_33 = arith.constant 0 : index
    %102 = vector.load %arg1[%c0_31, %c5, %c0_32, %c0_33] : memref<1x18x18x128xbf16, #tpu.memory_space<vmem>>, vector<1x1x18x128xbf16>
    %103 = arith.extf %102 : vector<1x1x18x128xbf16> to vector<1x1x18x128xf32>
    %104 = arith.maximumf %101, %103 : vector<1x1x18x128xf32>
    %c0_34 = arith.constant 0 : index
    %c6 = arith.constant 6 : index
    %c0_35 = arith.constant 0 : index
    %c0_36 = arith.constant 0 : index
    %105 = vector.load %arg1[%c0_34, %c6, %c0_35, %c0_36] : memref<1x18x18x128xbf16, #tpu.memory_space<vmem>>, vector<1x1x18x128xbf16>
    %106 = arith.extf %105 : vector<1x1x18x128xbf16> to vector<1x1x18x128xf32>
    %107 = arith.maximumf %104, %106 : vector<1x1x18x128xf32>
    %108 = vector.extract_strided_slice %107 {offsets = [0, 0, 0, 0], sizes = [1, 1, 1, 128], strides = [1, 1, 1, 1]} : vector<1x1x18x128xf32> to vector<1x1x1x128xf32>
    %109 = vector.extract_strided_slice %107 {offsets = [0, 0, 1, 0], sizes = [1, 1, 1, 128], strides = [1, 1, 1, 1]} : vector<1x1x18x128xf32> to vector<1x1x1x128xf32>
    %110 = arith.maximumf %108, %109 : vector<1x1x1x128xf32>
    %111 = vector.extract_strided_slice %107 {offsets = [0, 0, 2, 0], sizes = [1, 1, 1, 128], strides = [1, 1, 1, 1]} : vector<1x1x18x128xf32> to vector<1x1x1x128xf32>
    %112 = arith.maximumf %110, %111 : vector<1x1x1x128xf32>
    %113 = vector.extract_strided_slice %107 {offsets = [0, 0, 2, 0], sizes = [1, 1, 1, 128], strides = [1, 1, 1, 1]} : vector<1x1x18x128xf32> to vector<1x1x1x128xf32>
    %114 = vector.extract_strided_slice %107 {offsets = [0, 0, 3, 0], sizes = [1, 1, 1, 128], strides = [1, 1, 1, 1]} : vector<1x1x18x128xf32> to vector<1x1x1x128xf32>
    %115 = arith.maximumf %113, %114 : vector<1x1x1x128xf32>
    %116 = vector.extract_strided_slice %107 {offsets = [0, 0, 4, 0], sizes = [1, 1, 1, 128], strides = [1, 1, 1, 1]} : vector<1x1x18x128xf32> to vector<1x1x1x128xf32>
    %117 = arith.maximumf %115, %116 : vector<1x1x1x128xf32>
    %118 = vector.extract_strided_slice %107 {offsets = [0, 0, 4, 0], sizes = [1, 1, 1, 128], strides = [1, 1, 1, 1]} : vector<1x1x18x128xf32> to vector<1x1x1x128xf32>
    %119 = vector.extract_strided_slice %107 {offsets = [0, 0, 5, 0], sizes = [1, 1, 1, 128], strides = [1, 1, 1, 1]} : vector<1x1x18x128xf32> to vector<1x1x1x128xf32>
    %120 = arith.maximumf %118, %119 : vector<1x1x1x128xf32>
    %121 = vector.extract_strided_slice %107 {offsets = [0, 0, 6, 0], sizes = [1, 1, 1, 128], strides = [1, 1, 1, 1]} : vector<1x1x18x128xf32> to vector<1x1x1x128xf32>
    %122 = arith.maximumf %120, %121 : vector<1x1x1x128xf32>
    %123 = vector.extract_strided_slice %107 {offsets = [0, 0, 6, 0], sizes = [1, 1, 1, 128], strides = [1, 1, 1, 1]} : vector<1x1x18x128xf32> to vector<1x1x1x128xf32>
    %124 = vector.extract_strided_slice %107 {offsets = [0, 0, 7, 0], sizes = [1, 1, 1, 128], strides = [1, 1, 1, 1]} : vector<1x1x18x128xf32> to vector<1x1x1x128xf32>
    %125 = arith.maximumf %123, %124 : vector<1x1x1x128xf32>
    %126 = vector.extract_strided_slice %107 {offsets = [0, 0, 8, 0], sizes = [1, 1, 1, 128], strides = [1, 1, 1, 1]} : vector<1x1x18x128xf32> to vector<1x1x1x128xf32>
    %127 = arith.maximumf %125, %126 : vector<1x1x1x128xf32>
    %128 = vector.extract_strided_slice %107 {offsets = [0, 0, 8, 0], sizes = [1, 1, 1, 128], strides = [1, 1, 1, 1]} : vector<1x1x18x128xf32> to vector<1x1x1x128xf32>
    %129 = vector.extract_strided_slice %107 {offsets = [0, 0, 9, 0], sizes = [1, 1, 1, 128], strides = [1, 1, 1, 1]} : vector<1x1x18x128xf32> to vector<1x1x1x128xf32>
    %130 = arith.maximumf %128, %129 : vector<1x1x1x128xf32>
    %131 = vector.extract_strided_slice %107 {offsets = [0, 0, 10, 0], sizes = [1, 1, 1, 128], strides = [1, 1, 1, 1]} : vector<1x1x18x128xf32> to vector<1x1x1x128xf32>
    %132 = arith.maximumf %130, %131 : vector<1x1x1x128xf32>
    %133 = vector.extract_strided_slice %107 {offsets = [0, 0, 10, 0], sizes = [1, 1, 1, 128], strides = [1, 1, 1, 1]} : vector<1x1x18x128xf32> to vector<1x1x1x128xf32>
    %134 = vector.extract_strided_slice %107 {offsets = [0, 0, 11, 0], sizes = [1, 1, 1, 128], strides = [1, 1, 1, 1]} : vector<1x1x18x128xf32> to vector<1x1x1x128xf32>
    %135 = arith.maximumf %133, %134 : vector<1x1x1x128xf32>
    %136 = vector.extract_strided_slice %107 {offsets = [0, 0, 12, 0], sizes = [1, 1, 1, 128], strides = [1, 1, 1, 1]} : vector<1x1x18x128xf32> to vector<1x1x1x128xf32>
    %137 = arith.maximumf %135, %136 : vector<1x1x1x128xf32>
    %138 = vector.extract_strided_slice %107 {offsets = [0, 0, 12, 0], sizes = [1, 1, 1, 128], strides = [1, 1, 1, 1]} : vector<1x1x18x128xf32> to vector<1x1x1x128xf32>
    %139 = vector.extract_strided_slice %107 {offsets = [0, 0, 13, 0], sizes = [1, 1, 1, 128], strides = [1, 1, 1, 1]} : vector<1x1x18x128xf32> to vector<1x1x1x128xf32>
    %140 = arith.maximumf %138, %139 : vector<1x1x1x128xf32>
    %141 = vector.extract_strided_slice %107 {offsets = [0, 0, 14, 0], sizes = [1, 1, 1, 128], strides = [1, 1, 1, 1]} : vector<1x1x18x128xf32> to vector<1x1x1x128xf32>
    %142 = arith.maximumf %140, %141 : vector<1x1x1x128xf32>
    %143 = vector.extract_strided_slice %107 {offsets = [0, 0, 14, 0], sizes = [1, 1, 1, 128], strides = [1, 1, 1, 1]} : vector<1x1x18x128xf32> to vector<1x1x1x128xf32>
    %144 = vector.extract_strided_slice %107 {offsets = [0, 0, 15, 0], sizes = [1, 1, 1, 128], strides = [1, 1, 1, 1]} : vector<1x1x18x128xf32> to vector<1x1x1x128xf32>
    %145 = arith.maximumf %143, %144 : vector<1x1x1x128xf32>
    %146 = vector.extract_strided_slice %107 {offsets = [0, 0, 16, 0], sizes = [1, 1, 1, 128], strides = [1, 1, 1, 1]} : vector<1x1x18x128xf32> to vector<1x1x1x128xf32>
    %147 = arith.maximumf %145, %146 : vector<1x1x1x128xf32>
    %148 = tpu.concatenate %112, %117, %122, %127, %132, %137, %142, %147 in 2 : vector<1x1x1x128xf32>, vector<1x1x1x128xf32>, vector<1x1x1x128xf32>, vector<1x1x1x128xf32>, vector<1x1x1x128xf32>, vector<1x1x1x128xf32>, vector<1x1x1x128xf32>, vector<1x1x1x128xf32> -> vector<1x1x8x128xf32>
    %c0_37 = arith.constant 0 : index
    %c2_38 = arith.constant 2 : index
    %c0_39 = arith.constant 0 : index
    %c0_40 = arith.constant 0 : index
    %149 = vector.load %arg2[%c0_37, %c2_38, %c0_39, %c0_40] : memref<1x8x8x128xf32, #tpu.memory_space<vmem>>, vector<1x1x8x128xf32>
    tpu.vector_store %arg2[%c0_37, %c2_38, %c0_39, %c0_40], %148 {strides = array<i32>} : memref<1x8x8x128xf32, #tpu.memory_space<vmem>>, vector<1x1x8x128xf32>,
    %c0_41 = arith.constant 0 : index
    %c6_42 = arith.constant 6 : index
    %c0_43 = arith.constant 0 : index
    %c0_44 = arith.constant 0 : index
    %150 = vector.load %arg1[%c0_41, %c6_42, %c0_43, %c0_44] : memref<1x18x18x128xbf16, #tpu.memory_space<vmem>>, vector<1x1x18x128xbf16>
    %151 = arith.extf %150 : vector<1x1x18x128xbf16> to vector<1x1x18x128xf32>
    %c0_45 = arith.constant 0 : index
    %c7 = arith.constant 7 : index
    %c0_46 = arith.constant 0 : index
    %c0_47 = arith.constant 0 : index
    %152 = vector.load %arg1[%c0_45, %c7, %c0_46, %c0_47] : memref<1x18x18x128xbf16, #tpu.memory_space<vmem>>, vector<1x1x18x128xbf16>
    %153 = arith.extf %152 : vector<1x1x18x128xbf16> to vector<1x1x18x128xf32>
    %154 = arith.maximumf %151, %153 : vector<1x1x18x128xf32>
    %c0_48 = arith.constant 0 : index
    %c8 = arith.constant 8 : index
    %c0_49 = arith.constant 0 : index
    %c0_50 = arith.constant 0 : index
    %155 = vector.load %arg1[%c0_48, %c8, %c0_49, %c0_50] : memref<1x18x18x128xbf16, #tpu.memory_space<vmem>>, vector<1x1x18x128xbf16>
    %156 = arith.extf %155 : vector<1x1x18x128xbf16> to vector<1x1x18x128xf32>
    %157 = arith.maximumf %154, %156 : vector<1x1x18x128xf32>
    %158 = vector.extract_strided_slice %157 {offsets = [0, 0, 0, 0], sizes = [1, 1, 1, 128], strides = [1, 1, 1, 1]} : vector<1x1x18x128xf32> to vector<1x1x1x128xf32>
    %159 = vector.extract_strided_slice %157 {offsets = [0, 0, 1, 0], sizes = [1, 1, 1, 128], strides = [1, 1, 1, 1]} : vector<1x1x18x128xf32> to vector<1x1x1x128xf32>
    %160 = arith.maximumf %158, %159 : vector<1x1x1x128xf32>
    %161 = vector.extract_strided_slice %157 {offsets = [0, 0, 2, 0], sizes = [1, 1, 1, 128], strides = [1, 1, 1, 1]} : vector<1x1x18x128xf32> to vector<1x1x1x128xf32>
    %162 = arith.maximumf %160, %161 : vector<1x1x1x128xf32>
    %163 = vector.extract_strided_slice %157 {offsets = [0, 0, 2, 0], sizes = [1, 1, 1, 128], strides = [1, 1, 1, 1]} : vector<1x1x18x128xf32> to vector<1x1x1x128xf32>
    %164 = vector.extract_strided_slice %157 {offsets = [0, 0, 3, 0], sizes = [1, 1, 1, 128], strides = [1, 1, 1, 1]} : vector<1x1x18x128xf32> to vector<1x1x1x128xf32>
    %165 = arith.maximumf %163, %164 : vector<1x1x1x128xf32>
    %166 = vector.extract_strided_slice %157 {offsets = [0, 0, 4, 0], sizes = [1, 1, 1, 128], strides = [1, 1, 1, 1]} : vector<1x1x18x128xf32> to vector<1x1x1x128xf32>
    %167 = arith.maximumf %165, %166 : vector<1x1x1x128xf32>
    %168 = vector.extract_strided_slice %157 {offsets = [0, 0, 4, 0], sizes = [1, 1, 1, 128], strides = [1, 1, 1, 1]} : vector<1x1x18x128xf32> to vector<1x1x1x128xf32>
    %169 = vector.extract_strided_slice %157 {offsets = [0, 0, 5, 0], sizes = [1, 1, 1, 128], strides = [1, 1, 1, 1]} : vector<1x1x18x128xf32> to vector<1x1x1x128xf32>
    %170 = arith.maximumf %168, %169 : vector<1x1x1x128xf32>
    %171 = vector.extract_strided_slice %157 {offsets = [0, 0, 6, 0], sizes = [1, 1, 1, 128], strides = [1, 1, 1, 1]} : vector<1x1x18x128xf32> to vector<1x1x1x128xf32>
    %172 = arith.maximumf %170, %171 : vector<1x1x1x128xf32>
    %173 = vector.extract_strided_slice %157 {offsets = [0, 0, 6, 0], sizes = [1, 1, 1, 128], strides = [1, 1, 1, 1]} : vector<1x1x18x128xf32> to vector<1x1x1x128xf32>
    %174 = vector.extract_strided_slice %157 {offsets = [0, 0, 7, 0], sizes = [1, 1, 1, 128], strides = [1, 1, 1, 1]} : vector<1x1x18x128xf32> to vector<1x1x1x128xf32>
    %175 = arith.maximumf %173, %174 : vector<1x1x1x128xf32>
    %176 = vector.extract_strided_slice %157 {offsets = [0, 0, 8, 0], sizes = [1, 1, 1, 128], strides = [1, 1, 1, 1]} : vector<1x1x18x128xf32> to vector<1x1x1x128xf32>
    %177 = arith.maximumf %175, %176 : vector<1x1x1x128xf32>
    %178 = vector.extract_strided_slice %157 {offsets = [0, 0, 8, 0], sizes = [1, 1, 1, 128], strides = [1, 1, 1, 1]} : vector<1x1x18x128xf32> to vector<1x1x1x128xf32>
    %179 = vector.extract_strided_slice %157 {offsets = [0, 0, 9, 0], sizes = [1, 1, 1, 128], strides = [1, 1, 1, 1]} : vector<1x1x18x128xf32> to vector<1x1x1x128xf32>
    %180 = arith.maximumf %178, %179 : vector<1x1x1x128xf32>
    %181 = vector.extract_strided_slice %157 {offsets = [0, 0, 10, 0], sizes = [1, 1, 1, 128], strides = [1, 1, 1, 1]} : vector<1x1x18x128xf32> to vector<1x1x1x128xf32>
    %182 = arith.maximumf %180, %181 : vector<1x1x1x128xf32>
    %183 = vector.extract_strided_slice %157 {offsets = [0, 0, 10, 0], sizes = [1, 1, 1, 128], strides = [1, 1, 1, 1]} : vector<1x1x18x128xf32> to vector<1x1x1x128xf32>
    %184 = vector.extract_strided_slice %157 {offsets = [0, 0, 11, 0], sizes = [1, 1, 1, 128], strides = [1, 1, 1, 1]} : vector<1x1x18x128xf32> to vector<1x1x1x128xf32>
    %185 = arith.maximumf %183, %184 : vector<1x1x1x128xf32>
    %186 = vector.extract_strided_slice %157 {offsets = [0, 0, 12, 0], sizes = [1, 1, 1, 128], strides = [1, 1, 1, 1]} : vector<1x1x18x128xf32> to vector<1x1x1x128xf32>
    %187 = arith.maximumf %185, %186 : vector<1x1x1x128xf32>
    %188 = vector.extract_strided_slice %157 {offsets = [0, 0, 12, 0], sizes = [1, 1, 1, 128], strides = [1, 1, 1, 1]} : vector<1x1x18x128xf32> to vector<1x1x1x128xf32>
    %189 = vector.extract_strided_slice %157 {offsets = [0, 0, 13, 0], sizes = [1, 1, 1, 128], strides = [1, 1, 1, 1]} : vector<1x1x18x128xf32> to vector<1x1x1x128xf32>
    %190 = arith.maximumf %188, %189 : vector<1x1x1x128xf32>
    %191 = vector.extract_strided_slice %157 {offsets = [0, 0, 14, 0], sizes = [1, 1, 1, 128], strides = [1, 1, 1, 1]} : vector<1x1x18x128xf32> to vector<1x1x1x128xf32>
    %192 = arith.maximumf %190, %191 : vector<1x1x1x128xf32>
    %193 = vector.extract_strided_slice %157 {offsets = [0, 0, 14, 0], sizes = [1, 1, 1, 128], strides = [1, 1, 1, 1]} : vector<1x1x18x128xf32> to vector<1x1x1x128xf32>
    %194 = vector.extract_strided_slice %157 {offsets = [0, 0, 15, 0], sizes = [1, 1, 1, 128], strides = [1, 1, 1, 1]} : vector<1x1x18x128xf32> to vector<1x1x1x128xf32>
    %195 = arith.maximumf %193, %194 : vector<1x1x1x128xf32>
    %196 = vector.extract_strided_slice %157 {offsets = [0, 0, 16, 0], sizes = [1, 1, 1, 128], strides = [1, 1, 1, 1]} : vector<1x1x18x128xf32> to vector<1x1x1x128xf32>
    %197 = arith.maximumf %195, %196 : vector<1x1x1x128xf32>
    %198 = tpu.concatenate %162, %167, %172, %177, %182, %187, %192, %197 in 2 : vector<1x1x1x128xf32>, vector<1x1x1x128xf32>, vector<1x1x1x128xf32>, vector<1x1x1x128xf32>, vector<1x1x1x128xf32>, vector<1x1x1x128xf32>, vector<1x1x1x128xf32>, vector<1x1x1x128xf32> -> vector<1x1x8x128xf32>
    %c0_51 = arith.constant 0 : index
    %c3_52 = arith.constant 3 : index
    %c0_53 = arith.constant 0 : index
    %c0_54 = arith.constant 0 : index
    %199 = vector.load %arg2[%c0_51, %c3_52, %c0_53, %c0_54] : memref<1x8x8x128xf32, #tpu.memory_space<vmem>>, vector<1x1x8x128xf32>
    tpu.vector_store %arg2[%c0_51, %c3_52, %c0_53, %c0_54], %198 {strides = array<i32>} : memref<1x8x8x128xf32, #tpu.memory_space<vmem>>, vector<1x1x8x128xf32>,
    %c0_55 = arith.constant 0 : index
    %c8_56 = arith.constant 8 : index
    %c0_57 = arith.constant 0 : index
    %c0_58 = arith.constant 0 : index
    %200 = vector.load %arg1[%c0_55, %c8_56, %c0_57, %c0_58] : memref<1x18x18x128xbf16, #tpu.memory_space<vmem>>, vector<1x1x18x128xbf16>
    %201 = arith.extf %200 : vector<1x1x18x128xbf16> to vector<1x1x18x128xf32>
    %c0_59 = arith.constant 0 : index
    %c9 = arith.constant 9 : index
    %c0_60 = arith.constant 0 : index
    %c0_61 = arith.constant 0 : index
    %202 = vector.load %arg1[%c0_59, %c9, %c0_60, %c0_61] : memref<1x18x18x128xbf16, #tpu.memory_space<vmem>>, vector<1x1x18x128xbf16>
    %203 = arith.extf %202 : vector<1x1x18x128xbf16> to vector<1x1x18x128xf32>
    %204 = arith.maximumf %201, %203 : vector<1x1x18x128xf32>
    %c0_62 = arith.constant 0 : index
    %c10 = arith.constant 10 : index
    %c0_63 = arith.constant 0 : index
    %c0_64 = arith.constant 0 : index
    %205 = vector.load %arg1[%c0_62, %c10, %c0_63, %c0_64] : memref<1x18x18x128xbf16, #tpu.memory_space<vmem>>, vector<1x1x18x128xbf16>
    %206 = arith.extf %205 : vector<1x1x18x128xbf16> to vector<1x1x18x128xf32>
    %207 = arith.maximumf %204, %206 : vector<1x1x18x128xf32>
    %208 = vector.extract_strided_slice %207 {offsets = [0, 0, 0, 0], sizes = [1, 1, 1, 128], strides = [1, 1, 1, 1]} : vector<1x1x18x128xf32> to vector<1x1x1x128xf32>
    %209 = vector.extract_strided_slice %207 {offsets = [0, 0, 1, 0], sizes = [1, 1, 1, 128], strides = [1, 1, 1, 1]} : vector<1x1x18x128xf32> to vector<1x1x1x128xf32>
    %210 = arith.maximumf %208, %209 : vector<1x1x1x128xf32>
    %211 = vector.extract_strided_slice %207 {offsets = [0, 0, 2, 0], sizes = [1, 1, 1, 128], strides = [1, 1, 1, 1]} : vector<1x1x18x128xf32> to vector<1x1x1x128xf32>
    %212 = arith.maximumf %210, %211 : vector<1x1x1x128xf32>
    %213 = vector.extract_strided_slice %207 {offsets = [0, 0, 2, 0], sizes = [1, 1, 1, 128], strides = [1, 1, 1, 1]} : vector<1x1x18x128xf32> to vector<1x1x1x128xf32>
    %214 = vector.extract_strided_slice %207 {offsets = [0, 0, 3, 0], sizes = [1, 1, 1, 128], strides = [1, 1, 1, 1]} : vector<1x1x18x128xf32> to vector<1x1x1x128xf32>
    %215 = arith.maximumf %213, %214 : vector<1x1x1x128xf32>
    %216 = vector.extract_strided_slice %207 {offsets = [0, 0, 4, 0], sizes = [1, 1, 1, 128], strides = [1, 1, 1, 1]} : vector<1x1x18x128xf32> to vector<1x1x1x128xf32>
    %217 = arith.maximumf %215, %216 : vector<1x1x1x128xf32>
    %218 = vector.extract_strided_slice %207 {offsets = [0, 0, 4, 0], sizes = [1, 1, 1, 128], strides = [1, 1, 1, 1]} : vector<1x1x18x128xf32> to vector<1x1x1x128xf32>
    %219 = vector.extract_strided_slice %207 {offsets = [0, 0, 5, 0], sizes = [1, 1, 1, 128], strides = [1, 1, 1, 1]} : vector<1x1x18x128xf32> to vector<1x1x1x128xf32>
    %220 = arith.maximumf %218, %219 : vector<1x1x1x128xf32>
    %221 = vector.extract_strided_slice %207 {offsets = [0, 0, 6, 0], sizes = [1, 1, 1, 128], strides = [1, 1, 1, 1]} : vector<1x1x18x128xf32> to vector<1x1x1x128xf32>
    %222 = arith.maximumf %220, %221 : vector<1x1x1x128xf32>
    %223 = vector.extract_strided_slice %207 {offsets = [0, 0, 6, 0], sizes = [1, 1, 1, 128], strides = [1, 1, 1, 1]} : vector<1x1x18x128xf32> to vector<1x1x1x128xf32>
    %224 = vector.extract_strided_slice %207 {offsets = [0, 0, 7, 0], sizes = [1, 1, 1, 128], strides = [1, 1, 1, 1]} : vector<1x1x18x128xf32> to vector<1x1x1x128xf32>
    %225 = arith.maximumf %223, %224 : vector<1x1x1x128xf32>
    %226 = vector.extract_strided_slice %207 {offsets = [0, 0, 8, 0], sizes = [1, 1, 1, 128], strides = [1, 1, 1, 1]} : vector<1x1x18x128xf32> to vector<1x1x1x128xf32>
    %227 = arith.maximumf %225, %226 : vector<1x1x1x128xf32>
    %228 = vector.extract_strided_slice %207 {offsets = [0, 0, 8, 0], sizes = [1, 1, 1, 128], strides = [1, 1, 1, 1]} : vector<1x1x18x128xf32> to vector<1x1x1x128xf32>
    %229 = vector.extract_strided_slice %207 {offsets = [0, 0, 9, 0], sizes = [1, 1, 1, 128], strides = [1, 1, 1, 1]} : vector<1x1x18x128xf32> to vector<1x1x1x128xf32>
    %230 = arith.maximumf %228, %229 : vector<1x1x1x128xf32>
    %231 = vector.extract_strided_slice %207 {offsets = [0, 0, 10, 0], sizes = [1, 1, 1, 128], strides = [1, 1, 1, 1]} : vector<1x1x18x128xf32> to vector<1x1x1x128xf32>
    %232 = arith.maximumf %230, %231 : vector<1x1x1x128xf32>
    %233 = vector.extract_strided_slice %207 {offsets = [0, 0, 10, 0], sizes = [1, 1, 1, 128], strides = [1, 1, 1, 1]} : vector<1x1x18x128xf32> to vector<1x1x1x128xf32>
    %234 = vector.extract_strided_slice %207 {offsets = [0, 0, 11, 0], sizes = [1, 1, 1, 128], strides = [1, 1, 1, 1]} : vector<1x1x18x128xf32> to vector<1x1x1x128xf32>
    %235 = arith.maximumf %233, %234 : vector<1x1x1x128xf32>
    %236 = vector.extract_strided_slice %207 {offsets = [0, 0, 12, 0], sizes = [1, 1, 1, 128], strides = [1, 1, 1, 1]} : vector<1x1x18x128xf32> to vector<1x1x1x128xf32>
    %237 = arith.maximumf %235, %236 : vector<1x1x1x128xf32>
    %238 = vector.extract_strided_slice %207 {offsets = [0, 0, 12, 0], sizes = [1, 1, 1, 128], strides = [1, 1, 1, 1]} : vector<1x1x18x128xf32> to vector<1x1x1x128xf32>
    %239 = vector.extract_strided_slice %207 {offsets = [0, 0, 13, 0], sizes = [1, 1, 1, 128], strides = [1, 1, 1, 1]} : vector<1x1x18x128xf32> to vector<1x1x1x128xf32>
    %240 = arith.maximumf %238, %239 : vector<1x1x1x128xf32>
    %241 = vector.extract_strided_slice %207 {offsets = [0, 0, 14, 0], sizes = [1, 1, 1, 128], strides = [1, 1, 1, 1]} : vector<1x1x18x128xf32> to vector<1x1x1x128xf32>
    %242 = arith.maximumf %240, %241 : vector<1x1x1x128xf32>
    %243 = vector.extract_strided_slice %207 {offsets = [0, 0, 14, 0], sizes = [1, 1, 1, 128], strides = [1, 1, 1, 1]} : vector<1x1x18x128xf32> to vector<1x1x1x128xf32>
    %244 = vector.extract_strided_slice %207 {offsets = [0, 0, 15, 0], sizes = [1, 1, 1, 128], strides = [1, 1, 1, 1]} : vector<1x1x18x128xf32> to vector<1x1x1x128xf32>
    %245 = arith.maximumf %243, %244 : vector<1x1x1x128xf32>
    %246 = vector.extract_strided_slice %207 {offsets = [0, 0, 16, 0], sizes = [1, 1, 1, 128], strides = [1, 1, 1, 1]} : vector<1x1x18x128xf32> to vector<1x1x1x128xf32>
    %247 = arith.maximumf %245, %246 : vector<1x1x1x128xf32>
    %248 = tpu.concatenate %212, %217, %222, %227, %232, %237, %242, %247 in 2 : vector<1x1x1x128xf32>, vector<1x1x1x128xf32>, vector<1x1x1x128xf32>, vector<1x1x1x128xf32>, vector<1x1x1x128xf32>, vector<1x1x1x128xf32>, vector<1x1x1x128xf32>, vector<1x1x1x128xf32> -> vector<1x1x8x128xf32>
    %c0_65 = arith.constant 0 : index
    %c4_66 = arith.constant 4 : index
    %c0_67 = arith.constant 0 : index
    %c0_68 = arith.constant 0 : index
    %249 = vector.load %arg2[%c0_65, %c4_66, %c0_67, %c0_68] : memref<1x8x8x128xf32, #tpu.memory_space<vmem>>, vector<1x1x8x128xf32>
    tpu.vector_store %arg2[%c0_65, %c4_66, %c0_67, %c0_68], %248 {strides = array<i32>} : memref<1x8x8x128xf32, #tpu.memory_space<vmem>>, vector<1x1x8x128xf32>,
    %c0_69 = arith.constant 0 : index
    %c10_70 = arith.constant 10 : index
    %c0_71 = arith.constant 0 : index
    %c0_72 = arith.constant 0 : index
    %250 = vector.load %arg1[%c0_69, %c10_70, %c0_71, %c0_72] : memref<1x18x18x128xbf16, #tpu.memory_space<vmem>>, vector<1x1x18x128xbf16>
    %251 = arith.extf %250 : vector<1x1x18x128xbf16> to vector<1x1x18x128xf32>
    %c0_73 = arith.constant 0 : index
    %c11 = arith.constant 11 : index
    %c0_74 = arith.constant 0 : index
    %c0_75 = arith.constant 0 : index
    %252 = vector.load %arg1[%c0_73, %c11, %c0_74, %c0_75] : memref<1x18x18x128xbf16, #tpu.memory_space<vmem>>, vector<1x1x18x128xbf16>
    %253 = arith.extf %252 : vector<1x1x18x128xbf16> to vector<1x1x18x128xf32>
    %254 = arith.maximumf %251, %253 : vector<1x1x18x128xf32>
    %c0_76 = arith.constant 0 : index
    %c12 = arith.constant 12 : index
    %c0_77 = arith.constant 0 : index
    %c0_78 = arith.constant 0 : index
    %255 = vector.load %arg1[%c0_76, %c12, %c0_77, %c0_78] : memref<1x18x18x128xbf16, #tpu.memory_space<vmem>>, vector<1x1x18x128xbf16>
    %256 = arith.extf %255 : vector<1x1x18x128xbf16> to vector<1x1x18x128xf32>
    %257 = arith.maximumf %254, %256 : vector<1x1x18x128xf32>
    %258 = vector.extract_strided_slice %257 {offsets = [0, 0, 0, 0], sizes = [1, 1, 1, 128], strides = [1, 1, 1, 1]} : vector<1x1x18x128xf32> to vector<1x1x1x128xf32>
    %259 = vector.extract_strided_slice %257 {offsets = [0, 0, 1, 0], sizes = [1, 1, 1, 128], strides = [1, 1, 1, 1]} : vector<1x1x18x128xf32> to vector<1x1x1x128xf32>
    %260 = arith.maximumf %258, %259 : vector<1x1x1x128xf32>
    %261 = vector.extract_strided_slice %257 {offsets = [0, 0, 2, 0], sizes = [1, 1, 1, 128], strides = [1, 1, 1, 1]} : vector<1x1x18x128xf32> to vector<1x1x1x128xf32>
    %262 = arith.maximumf %260, %261 : vector<1x1x1x128xf32>
    %263 = vector.extract_strided_slice %257 {offsets = [0, 0, 2, 0], sizes = [1, 1, 1, 128], strides = [1, 1, 1, 1]} : vector<1x1x18x128xf32> to vector<1x1x1x128xf32>
    %264 = vector.extract_strided_slice %257 {offsets = [0, 0, 3, 0], sizes = [1, 1, 1, 128], strides = [1, 1, 1, 1]} : vector<1x1x18x128xf32> to vector<1x1x1x128xf32>
    %265 = arith.maximumf %263, %264 : vector<1x1x1x128xf32>
    %266 = vector.extract_strided_slice %257 {offsets = [0, 0, 4, 0], sizes = [1, 1, 1, 128], strides = [1, 1, 1, 1]} : vector<1x1x18x128xf32> to vector<1x1x1x128xf32>
    %267 = arith.maximumf %265, %266 : vector<1x1x1x128xf32>
    %268 = vector.extract_strided_slice %257 {offsets = [0, 0, 4, 0], sizes = [1, 1, 1, 128], strides = [1, 1, 1, 1]} : vector<1x1x18x128xf32> to vector<1x1x1x128xf32>
    %269 = vector.extract_strided_slice %257 {offsets = [0, 0, 5, 0], sizes = [1, 1, 1, 128], strides = [1, 1, 1, 1]} : vector<1x1x18x128xf32> to vector<1x1x1x128xf32>
    %270 = arith.maximumf %268, %269 : vector<1x1x1x128xf32>
    %271 = vector.extract_strided_slice %257 {offsets = [0, 0, 6, 0], sizes = [1, 1, 1, 128], strides = [1, 1, 1, 1]} : vector<1x1x18x128xf32> to vector<1x1x1x128xf32>
    %272 = arith.maximumf %270, %271 : vector<1x1x1x128xf32>
    %273 = vector.extract_strided_slice %257 {offsets = [0, 0, 6, 0], sizes = [1, 1, 1, 128], strides = [1, 1, 1, 1]} : vector<1x1x18x128xf32> to vector<1x1x1x128xf32>
    %274 = vector.extract_strided_slice %257 {offsets = [0, 0, 7, 0], sizes = [1, 1, 1, 128], strides = [1, 1, 1, 1]} : vector<1x1x18x128xf32> to vector<1x1x1x128xf32>
    %275 = arith.maximumf %273, %274 : vector<1x1x1x128xf32>
    %276 = vector.extract_strided_slice %257 {offsets = [0, 0, 8, 0], sizes = [1, 1, 1, 128], strides = [1, 1, 1, 1]} : vector<1x1x18x128xf32> to vector<1x1x1x128xf32>
    %277 = arith.maximumf %275, %276 : vector<1x1x1x128xf32>
    %278 = vector.extract_strided_slice %257 {offsets = [0, 0, 8, 0], sizes = [1, 1, 1, 128], strides = [1, 1, 1, 1]} : vector<1x1x18x128xf32> to vector<1x1x1x128xf32>
    %279 = vector.extract_strided_slice %257 {offsets = [0, 0, 9, 0], sizes = [1, 1, 1, 128], strides = [1, 1, 1, 1]} : vector<1x1x18x128xf32> to vector<1x1x1x128xf32>
    %280 = arith.maximumf %278, %279 : vector<1x1x1x128xf32>
    %281 = vector.extract_strided_slice %257 {offsets = [0, 0, 10, 0], sizes = [1, 1, 1, 128], strides = [1, 1, 1, 1]} : vector<1x1x18x128xf32> to vector<1x1x1x128xf32>
    %282 = arith.maximumf %280, %281 : vector<1x1x1x128xf32>
    %283 = vector.extract_strided_slice %257 {offsets = [0, 0, 10, 0], sizes = [1, 1, 1, 128], strides = [1, 1, 1, 1]} : vector<1x1x18x128xf32> to vector<1x1x1x128xf32>
    %284 = vector.extract_strided_slice %257 {offsets = [0, 0, 11, 0], sizes = [1, 1, 1, 128], strides = [1, 1, 1, 1]} : vector<1x1x18x128xf32> to vector<1x1x1x128xf32>
    %285 = arith.maximumf %283, %284 : vector<1x1x1x128xf32>
    %286 = vector.extract_strided_slice %257 {offsets = [0, 0, 12, 0], sizes = [1, 1, 1, 128], strides = [1, 1, 1, 1]} : vector<1x1x18x128xf32> to vector<1x1x1x128xf32>
    %287 = arith.maximumf %285, %286 : vector<1x1x1x128xf32>
    %288 = vector.extract_strided_slice %257 {offsets = [0, 0, 12, 0], sizes = [1, 1, 1, 128], strides = [1, 1, 1, 1]} : vector<1x1x18x128xf32> to vector<1x1x1x128xf32>
    %289 = vector.extract_strided_slice %257 {offsets = [0, 0, 13, 0], sizes = [1, 1, 1, 128], strides = [1, 1, 1, 1]} : vector<1x1x18x128xf32> to vector<1x1x1x128xf32>
    %290 = arith.maximumf %288, %289 : vector<1x1x1x128xf32>
    %291 = vector.extract_strided_slice %257 {offsets = [0, 0, 14, 0], sizes = [1, 1, 1, 128], strides = [1, 1, 1, 1]} : vector<1x1x18x128xf32> to vector<1x1x1x128xf32>
    %292 = arith.maximumf %290, %291 : vector<1x1x1x128xf32>
    %293 = vector.extract_strided_slice %257 {offsets = [0, 0, 14, 0], sizes = [1, 1, 1, 128], strides = [1, 1, 1, 1]} : vector<1x1x18x128xf32> to vector<1x1x1x128xf32>
    %294 = vector.extract_strided_slice %257 {offsets = [0, 0, 15, 0], sizes = [1, 1, 1, 128], strides = [1, 1, 1, 1]} : vector<1x1x18x128xf32> to vector<1x1x1x128xf32>
    %295 = arith.maximumf %293, %294 : vector<1x1x1x128xf32>
    %296 = vector.extract_strided_slice %257 {offsets = [0, 0, 16, 0], sizes = [1, 1, 1, 128], strides = [1, 1, 1, 1]} : vector<1x1x18x128xf32> to vector<1x1x1x128xf32>
    %297 = arith.maximumf %295, %296 : vector<1x1x1x128xf32>
    %298 = tpu.concatenate %262, %267, %272, %277, %282, %287, %292, %297 in 2 : vector<1x1x1x128xf32>, vector<1x1x1x128xf32>, vector<1x1x1x128xf32>, vector<1x1x1x128xf32>, vector<1x1x1x128xf32>, vector<1x1x1x128xf32>, vector<1x1x1x128xf32>, vector<1x1x1x128xf32> -> vector<1x1x8x128xf32>
    %c0_79 = arith.constant 0 : index
    %c5_80 = arith.constant 5 : index
    %c0_81 = arith.constant 0 : index
    %c0_82 = arith.constant 0 : index
    %299 = vector.load %arg2[%c0_79, %c5_80, %c0_81, %c0_82] : memref<1x8x8x128xf32, #tpu.memory_space<vmem>>, vector<1x1x8x128xf32>
    tpu.vector_store %arg2[%c0_79, %c5_80, %c0_81, %c0_82], %298 {strides = array<i32>} : memref<1x8x8x128xf32, #tpu.memory_space<vmem>>, vector<1x1x8x128xf32>,
    %c0_83 = arith.constant 0 : index
    %c12_84 = arith.constant 12 : index
    %c0_85 = arith.constant 0 : index
    %c0_86 = arith.constant 0 : index
    %300 = vector.load %arg1[%c0_83, %c12_84, %c0_85, %c0_86] : memref<1x18x18x128xbf16, #tpu.memory_space<vmem>>, vector<1x1x18x128xbf16>
    %301 = arith.extf %300 : vector<1x1x18x128xbf16> to vector<1x1x18x128xf32>
    %c0_87 = arith.constant 0 : index
    %c13 = arith.constant 13 : index
    %c0_88 = arith.constant 0 : index
    %c0_89 = arith.constant 0 : index
    %302 = vector.load %arg1[%c0_87, %c13, %c0_88, %c0_89] : memref<1x18x18x128xbf16, #tpu.memory_space<vmem>>, vector<1x1x18x128xbf16>
    %303 = arith.extf %302 : vector<1x1x18x128xbf16> to vector<1x1x18x128xf32>
    %304 = arith.maximumf %301, %303 : vector<1x1x18x128xf32>
    %c0_90 = arith.constant 0 : index
    %c14 = arith.constant 14 : index
    %c0_91 = arith.constant 0 : index
    %c0_92 = arith.constant 0 : index
    %305 = vector.load %arg1[%c0_90, %c14, %c0_91, %c0_92] : memref<1x18x18x128xbf16, #tpu.memory_space<vmem>>, vector<1x1x18x128xbf16>
    %306 = arith.extf %305 : vector<1x1x18x128xbf16> to vector<1x1x18x128xf32>
    %307 = arith.maximumf %304, %306 : vector<1x1x18x128xf32>
    %308 = vector.extract_strided_slice %307 {offsets = [0, 0, 0, 0], sizes = [1, 1, 1, 128], strides = [1, 1, 1, 1]} : vector<1x1x18x128xf32> to vector<1x1x1x128xf32>
    %309 = vector.extract_strided_slice %307 {offsets = [0, 0, 1, 0], sizes = [1, 1, 1, 128], strides = [1, 1, 1, 1]} : vector<1x1x18x128xf32> to vector<1x1x1x128xf32>
    %310 = arith.maximumf %308, %309 : vector<1x1x1x128xf32>
    %311 = vector.extract_strided_slice %307 {offsets = [0, 0, 2, 0], sizes = [1, 1, 1, 128], strides = [1, 1, 1, 1]} : vector<1x1x18x128xf32> to vector<1x1x1x128xf32>
    %312 = arith.maximumf %310, %311 : vector<1x1x1x128xf32>
    %313 = vector.extract_strided_slice %307 {offsets = [0, 0, 2, 0], sizes = [1, 1, 1, 128], strides = [1, 1, 1, 1]} : vector<1x1x18x128xf32> to vector<1x1x1x128xf32>
    %314 = vector.extract_strided_slice %307 {offsets = [0, 0, 3, 0], sizes = [1, 1, 1, 128], strides = [1, 1, 1, 1]} : vector<1x1x18x128xf32> to vector<1x1x1x128xf32>
    %315 = arith.maximumf %313, %314 : vector<1x1x1x128xf32>
    %316 = vector.extract_strided_slice %307 {offsets = [0, 0, 4, 0], sizes = [1, 1, 1, 128], strides = [1, 1, 1, 1]} : vector<1x1x18x128xf32> to vector<1x1x1x128xf32>
    %317 = arith.maximumf %315, %316 : vector<1x1x1x128xf32>
    %318 = vector.extract_strided_slice %307 {offsets = [0, 0, 4, 0], sizes = [1, 1, 1, 128], strides = [1, 1, 1, 1]} : vector<1x1x18x128xf32> to vector<1x1x1x128xf32>
    %319 = vector.extract_strided_slice %307 {offsets = [0, 0, 5, 0], sizes = [1, 1, 1, 128], strides = [1, 1, 1, 1]} : vector<1x1x18x128xf32> to vector<1x1x1x128xf32>
    %320 = arith.maximumf %318, %319 : vector<1x1x1x128xf32>
    %321 = vector.extract_strided_slice %307 {offsets = [0, 0, 6, 0], sizes = [1, 1, 1, 128], strides = [1, 1, 1, 1]} : vector<1x1x18x128xf32> to vector<1x1x1x128xf32>
    %322 = arith.maximumf %320, %321 : vector<1x1x1x128xf32>
    %323 = vector.extract_strided_slice %307 {offsets = [0, 0, 6, 0], sizes = [1, 1, 1, 128], strides = [1, 1, 1, 1]} : vector<1x1x18x128xf32> to vector<1x1x1x128xf32>
    %324 = vector.extract_strided_slice %307 {offsets = [0, 0, 7, 0], sizes = [1, 1, 1, 128], strides = [1, 1, 1, 1]} : vector<1x1x18x128xf32> to vector<1x1x1x128xf32>
    %325 = arith.maximumf %323, %324 : vector<1x1x1x128xf32>
    %326 = vector.extract_strided_slice %307 {offsets = [0, 0, 8, 0], sizes = [1, 1, 1, 128], strides = [1, 1, 1, 1]} : vector<1x1x18x128xf32> to vector<1x1x1x128xf32>
    %327 = arith.maximumf %325, %326 : vector<1x1x1x128xf32>
    %328 = vector.extract_strided_slice %307 {offsets = [0, 0, 8, 0], sizes = [1, 1, 1, 128], strides = [1, 1, 1, 1]} : vector<1x1x18x128xf32> to vector<1x1x1x128xf32>
    %329 = vector.extract_strided_slice %307 {offsets = [0, 0, 9, 0], sizes = [1, 1, 1, 128], strides = [1, 1, 1, 1]} : vector<1x1x18x128xf32> to vector<1x1x1x128xf32>
    %330 = arith.maximumf %328, %329 : vector<1x1x1x128xf32>
    %331 = vector.extract_strided_slice %307 {offsets = [0, 0, 10, 0], sizes = [1, 1, 1, 128], strides = [1, 1, 1, 1]} : vector<1x1x18x128xf32> to vector<1x1x1x128xf32>
    %332 = arith.maximumf %330, %331 : vector<1x1x1x128xf32>
    %333 = vector.extract_strided_slice %307 {offsets = [0, 0, 10, 0], sizes = [1, 1, 1, 128], strides = [1, 1, 1, 1]} : vector<1x1x18x128xf32> to vector<1x1x1x128xf32>
    %334 = vector.extract_strided_slice %307 {offsets = [0, 0, 11, 0], sizes = [1, 1, 1, 128], strides = [1, 1, 1, 1]} : vector<1x1x18x128xf32> to vector<1x1x1x128xf32>
    %335 = arith.maximumf %333, %334 : vector<1x1x1x128xf32>
    %336 = vector.extract_strided_slice %307 {offsets = [0, 0, 12, 0], sizes = [1, 1, 1, 128], strides = [1, 1, 1, 1]} : vector<1x1x18x128xf32> to vector<1x1x1x128xf32>
    %337 = arith.maximumf %335, %336 : vector<1x1x1x128xf32>
    %338 = vector.extract_strided_slice %307 {offsets = [0, 0, 12, 0], sizes = [1, 1, 1, 128], strides = [1, 1, 1, 1]} : vector<1x1x18x128xf32> to vector<1x1x1x128xf32>
    %339 = vector.extract_strided_slice %307 {offsets = [0, 0, 13, 0], sizes = [1, 1, 1, 128], strides = [1, 1, 1, 1]} : vector<1x1x18x128xf32> to vector<1x1x1x128xf32>
    %340 = arith.maximumf %338, %339 : vector<1x1x1x128xf32>
    %341 = vector.extract_strided_slice %307 {offsets = [0, 0, 14, 0], sizes = [1, 1, 1, 128], strides = [1, 1, 1, 1]} : vector<1x1x18x128xf32> to vector<1x1x1x128xf32>
    %342 = arith.maximumf %340, %341 : vector<1x1x1x128xf32>
    %343 = vector.extract_strided_slice %307 {offsets = [0, 0, 14, 0], sizes = [1, 1, 1, 128], strides = [1, 1, 1, 1]} : vector<1x1x18x128xf32> to vector<1x1x1x128xf32>
    %344 = vector.extract_strided_slice %307 {offsets = [0, 0, 15, 0], sizes = [1, 1, 1, 128], strides = [1, 1, 1, 1]} : vector<1x1x18x128xf32> to vector<1x1x1x128xf32>
    %345 = arith.maximumf %343, %344 : vector<1x1x1x128xf32>
    %346 = vector.extract_strided_slice %307 {offsets = [0, 0, 16, 0], sizes = [1, 1, 1, 128], strides = [1, 1, 1, 1]} : vector<1x1x18x128xf32> to vector<1x1x1x128xf32>
    %347 = arith.maximumf %345, %346 : vector<1x1x1x128xf32>
    %348 = tpu.concatenate %312, %317, %322, %327, %332, %337, %342, %347 in 2 : vector<1x1x1x128xf32>, vector<1x1x1x128xf32>, vector<1x1x1x128xf32>, vector<1x1x1x128xf32>, vector<1x1x1x128xf32>, vector<1x1x1x128xf32>, vector<1x1x1x128xf32>, vector<1x1x1x128xf32> -> vector<1x1x8x128xf32>
    %c0_93 = arith.constant 0 : index
    %c6_94 = arith.constant 6 : index
    %c0_95 = arith.constant 0 : index
    %c0_96 = arith.constant 0 : index
    %349 = vector.load %arg2[%c0_93, %c6_94, %c0_95, %c0_96] : memref<1x8x8x128xf32, #tpu.memory_space<vmem>>, vector<1x1x8x128xf32>
    tpu.vector_store %arg2[%c0_93, %c6_94, %c0_95, %c0_96], %348 {strides = array<i32>} : memref<1x8x8x128xf32, #tpu.memory_space<vmem>>, vector<1x1x8x128xf32>,
    %c0_97 = arith.constant 0 : index
    %c14_98 = arith.constant 14 : index
    %c0_99 = arith.constant 0 : index
    %c0_100 = arith.constant 0 : index
    %350 = vector.load %arg1[%c0_97, %c14_98, %c0_99, %c0_100] : memref<1x18x18x128xbf16, #tpu.memory_space<vmem>>, vector<1x1x18x128xbf16>
    %351 = arith.extf %350 : vector<1x1x18x128xbf16> to vector<1x1x18x128xf32>
    %c0_101 = arith.constant 0 : index
    %c15 = arith.constant 15 : index
    %c0_102 = arith.constant 0 : index
    %c0_103 = arith.constant 0 : index
    %352 = vector.load %arg1[%c0_101, %c15, %c0_102, %c0_103] : memref<1x18x18x128xbf16, #tpu.memory_space<vmem>>, vector<1x1x18x128xbf16>
    %353 = arith.extf %352 : vector<1x1x18x128xbf16> to vector<1x1x18x128xf32>
    %354 = arith.maximumf %351, %353 : vector<1x1x18x128xf32>
    %c0_104 = arith.constant 0 : index
    %c16 = arith.constant 16 : index
    %c0_105 = arith.constant 0 : index
    %c0_106 = arith.constant 0 : index
    %355 = vector.load %arg1[%c0_104, %c16, %c0_105, %c0_106] : memref<1x18x18x128xbf16, #tpu.memory_space<vmem>>, vector<1x1x18x128xbf16>
    %356 = arith.extf %355 : vector<1x1x18x128xbf16> to vector<1x1x18x128xf32>
    %357 = arith.maximumf %354, %356 : vector<1x1x18x128xf32>
    %358 = vector.extract_strided_slice %357 {offsets = [0, 0, 0, 0], sizes = [1, 1, 1, 128], strides = [1, 1, 1, 1]} : vector<1x1x18x128xf32> to vector<1x1x1x128xf32>
    %359 = vector.extract_strided_slice %357 {offsets = [0, 0, 1, 0], sizes = [1, 1, 1, 128], strides = [1, 1, 1, 1]} : vector<1x1x18x128xf32> to vector<1x1x1x128xf32>
    %360 = arith.maximumf %358, %359 : vector<1x1x1x128xf32>
    %361 = vector.extract_strided_slice %357 {offsets = [0, 0, 2, 0], sizes = [1, 1, 1, 128], strides = [1, 1, 1, 1]} : vector<1x1x18x128xf32> to vector<1x1x1x128xf32>
    %362 = arith.maximumf %360, %361 : vector<1x1x1x128xf32>
    %363 = vector.extract_strided_slice %357 {offsets = [0, 0, 2, 0], sizes = [1, 1, 1, 128], strides = [1, 1, 1, 1]} : vector<1x1x18x128xf32> to vector<1x1x1x128xf32>
    %364 = vector.extract_strided_slice %357 {offsets = [0, 0, 3, 0], sizes = [1, 1, 1, 128], strides = [1, 1, 1, 1]} : vector<1x1x18x128xf32> to vector<1x1x1x128xf32>
    %365 = arith.maximumf %363, %364 : vector<1x1x1x128xf32>
    %366 = vector.extract_strided_slice %357 {offsets = [0, 0, 4, 0], sizes = [1, 1, 1, 128], strides = [1, 1, 1, 1]} : vector<1x1x18x128xf32> to vector<1x1x1x128xf32>
    %367 = arith.maximumf %365, %366 : vector<1x1x1x128xf32>
    %368 = vector.extract_strided_slice %357 {offsets = [0, 0, 4, 0], sizes = [1, 1, 1, 128], strides = [1, 1, 1, 1]} : vector<1x1x18x128xf32> to vector<1x1x1x128xf32>
    %369 = vector.extract_strided_slice %357 {offsets = [0, 0, 5, 0], sizes = [1, 1, 1, 128], strides = [1, 1, 1, 1]} : vector<1x1x18x128xf32> to vector<1x1x1x128xf32>
    %370 = arith.maximumf %368, %369 : vector<1x1x1x128xf32>
    %371 = vector.extract_strided_slice %357 {offsets = [0, 0, 6, 0], sizes = [1, 1, 1, 128], strides = [1, 1, 1, 1]} : vector<1x1x18x128xf32> to vector<1x1x1x128xf32>
    %372 = arith.maximumf %370, %371 : vector<1x1x1x128xf32>
    %373 = vector.extract_strided_slice %357 {offsets = [0, 0, 6, 0], sizes = [1, 1, 1, 128], strides = [1, 1, 1, 1]} : vector<1x1x18x128xf32> to vector<1x1x1x128xf32>
    %374 = vector.extract_strided_slice %357 {offsets = [0, 0, 7, 0], sizes = [1, 1, 1, 128], strides = [1, 1, 1, 1]} : vector<1x1x18x128xf32> to vector<1x1x1x128xf32>
    %375 = arith.maximumf %373, %374 : vector<1x1x1x128xf32>
    %376 = vector.extract_strided_slice %357 {offsets = [0, 0, 8, 0], sizes = [1, 1, 1, 128], strides = [1, 1, 1, 1]} : vector<1x1x18x128xf32> to vector<1x1x1x128xf32>
    %377 = arith.maximumf %375, %376 : vector<1x1x1x128xf32>
    %378 = vector.extract_strided_slice %357 {offsets = [0, 0, 8, 0], sizes = [1, 1, 1, 128], strides = [1, 1, 1, 1]} : vector<1x1x18x128xf32> to vector<1x1x1x128xf32>
    %379 = vector.extract_strided_slice %357 {offsets = [0, 0, 9, 0], sizes = [1, 1, 1, 128], strides = [1, 1, 1, 1]} : vector<1x1x18x128xf32> to vector<1x1x1x128xf32>
    %380 = arith.maximumf %378, %379 : vector<1x1x1x128xf32>
    %381 = vector.extract_strided_slice %357 {offsets = [0, 0, 10, 0], sizes = [1, 1, 1, 128], strides = [1, 1, 1, 1]} : vector<1x1x18x128xf32> to vector<1x1x1x128xf32>
    %382 = arith.maximumf %380, %381 : vector<1x1x1x128xf32>
    %383 = vector.extract_strided_slice %357 {offsets = [0, 0, 10, 0], sizes = [1, 1, 1, 128], strides = [1, 1, 1, 1]} : vector<1x1x18x128xf32> to vector<1x1x1x128xf32>
    %384 = vector.extract_strided_slice %357 {offsets = [0, 0, 11, 0], sizes = [1, 1, 1, 128], strides = [1, 1, 1, 1]} : vector<1x1x18x128xf32> to vector<1x1x1x128xf32>
    %385 = arith.maximumf %383, %384 : vector<1x1x1x128xf32>
    %386 = vector.extract_strided_slice %357 {offsets = [0, 0, 12, 0], sizes = [1, 1, 1, 128], strides = [1, 1, 1, 1]} : vector<1x1x18x128xf32> to vector<1x1x1x128xf32>
    %387 = arith.maximumf %385, %386 : vector<1x1x1x128xf32>
    %388 = vector.extract_strided_slice %357 {offsets = [0, 0, 12, 0], sizes = [1, 1, 1, 128], strides = [1, 1, 1, 1]} : vector<1x1x18x128xf32> to vector<1x1x1x128xf32>
    %389 = vector.extract_strided_slice %357 {offsets = [0, 0, 13, 0], sizes = [1, 1, 1, 128], strides = [1, 1, 1, 1]} : vector<1x1x18x128xf32> to vector<1x1x1x128xf32>
    %390 = arith.maximumf %388, %389 : vector<1x1x1x128xf32>
    %391 = vector.extract_strided_slice %357 {offsets = [0, 0, 14, 0], sizes = [1, 1, 1, 128], strides = [1, 1, 1, 1]} : vector<1x1x18x128xf32> to vector<1x1x1x128xf32>
    %392 = arith.maximumf %390, %391 : vector<1x1x1x128xf32>
    %393 = vector.extract_strided_slice %357 {offsets = [0, 0, 14, 0], sizes = [1, 1, 1, 128], strides = [1, 1, 1, 1]} : vector<1x1x18x128xf32> to vector<1x1x1x128xf32>
    %394 = vector.extract_strided_slice %357 {offsets = [0, 0, 15, 0], sizes = [1, 1, 1, 128], strides = [1, 1, 1, 1]} : vector<1x1x18x128xf32> to vector<1x1x1x128xf32>
    %395 = arith.maximumf %393, %394 : vector<1x1x1x128xf32>
    %396 = vector.extract_strided_slice %357 {offsets = [0, 0, 16, 0], sizes = [1, 1, 1, 128], strides = [1, 1, 1, 1]} : vector<1x1x18x128xf32> to vector<1x1x1x128xf32>
    %397 = arith.maximumf %395, %396 : vector<1x1x1x128xf32>
    %398 = tpu.concatenate %362, %367, %372, %377, %382, %387, %392, %397 in 2 : vector<1x1x1x128xf32>, vector<1x1x1x128xf32>, vector<1x1x1x128xf32>, vector<1x1x1x128xf32>, vector<1x1x1x128xf32>, vector<1x1x1x128xf32>, vector<1x1x1x128xf32>, vector<1x1x1x128xf32> -> vector<1x1x8x128xf32>
    %c0_107 = arith.constant 0 : index
    %c7_108 = arith.constant 7 : index
    %c0_109 = arith.constant 0 : index
    %c0_110 = arith.constant 0 : index
    %399 = vector.load %arg2[%c0_107, %c7_108, %c0_109, %c0_110] : memref<1x8x8x128xf32, #tpu.memory_space<vmem>>, vector<1x1x8x128xf32>
    tpu.vector_store %arg2[%c0_107, %c7_108, %c0_109, %c0_110], %398 {strides = array<i32>} : memref<1x8x8x128xf32, #tpu.memory_space<vmem>>, vector<1x1x8x128xf32>,
    return
  }
  func.func @transform_0(%arg0: i32) -> (i32, i32, i32, i32) {
    %c0_i32 = arith.constant 0 : i32
    %c0_i32_0 = arith.constant 0 : i32
    %c0_i32_1 = arith.constant 0 : i32
    %c0_i32_2 = arith.constant 0 : i32
    return %arg0, %c0_i32, %c0_i32_0, %c0_i32_1 : i32, i32, i32, i32
  }
  func.func @transform_1(%arg0: i32) -> (i32, i32, i32, i32) {
    %c0_i32 = arith.constant 0 : i32
    %c0_i32_0 = arith.constant 0 : i32
    %c0_i32_1 = arith.constant 0 : i32
    %c0_i32_2 = arith.constant 0 : i32
    return %arg0, %c0_i32, %c0_i32_0, %c0_i32_1 : i32, i32, i32, i32
  }
}

</mosaic_0001>

<bundles_post_ra>
// kernel: _lambda_.2
= control target key start
LH: loop header
LB: loop body
LE: loop exit
PB: predicated region body
PF: predicated region fallthrough
CT: control target
= control target key end

     0   :  { %9 = vsyncpa [#allocation3], 0  ;;  %s2147_s0 = inlined_call_operand.hbm [shape: bf16[512,147], index: 0, kind: input, shape index: {}]   ;;  %s2148_s1 = inlined_call_operand.hbm [shape: bf16[147,128], index: 1, kind: input, shape index: {}]   ;;  %s2149_s2 = inlined_call_operand.hbm [shape: f32[1,128], index: 2, kind: input, shape index: {}]   ;;  %s2150_s3 = inlined_call_operand.hbm [shape: f32[1,128], index: 3, kind: input, shape index: {}]   ;;  %s2151_s4 = inlined_call_operand.hbm [shape: bf16[512,128], index: 4, kind: output, shape index: {}]  }
   0x1   :  { %11 = vsyncpa [#allocation3 + $0x1], 0 }
   0x2   :  { %12 = vsyncpa [#allocation6], 0 }
   0x3   :  { %13 = vsyncpa [#allocation9], 0 }
   0x4   :  { %14 = vsyncpa [#allocation4], 0 }
   0x5   :  { %16 = vsyncpa [#allocation4 + $0x1], 0  ;;  %s1749_s15 = smov 0   ;;  %s1751_s16 = smov 0  }
   0x6   :  { %s1753_s17 = smov 0   ;;  %s1755_s18 = smov 0  }
   0x7 LB: > { %s1770_s19 = sadd.s32 4294967295, %s1709_s18   ;;  %s1115_s20 = sadd.s32 4294967294, %s1709_s18   ;;  %s1709_s18 = sphi %s1755_s18, %s2174_s18   ;;  %s1705_s17 = sphi %s1753_s17, %s2173_s17   ;;  %s1701_s16 = sphi %s1751_s16, %s2172_s16   ;;  %s1697_s15 = sphi %s1749_s15, %s2171_s15  }
   0x8   : > { %p42_p0 = scmp.ne.s32.totalorder %s1701_s16, %s1697_s15  ;;  %p2152_p1 = scmp.eq.s32.totalorder %s1770_s19, 0 }
   0x9   : > { %p135_p3 = scmp.eq.s32.totalorder %s1115_s20, 1  ;;  %p1116_p5 = scmp.ge.s32.totalorder %s1709_s18, 1 }
   0xa   : > { %p1779_p4 = por %p2152_p1, %p42_p0  ;;  %p142_p7 = scmp.lt.s32.totalorder %s1709_s18, 3 }
   0xb   : > { %p1784_p6 = por %p135_p3, %p42_p0  ;;  %s1711_s24 = smov [#allocation5]  }
   0xc   : > { %s2155_s21 = scalar_select %p1779_p4, 1, 0 }
   0xd   : > { %s2156_s22 = scalar_select %p1784_p6, 1, 0 }
   0xe   : > { %p1789_p8 = pnand %p1116_p5, %p142_p7  ;;  %s154_s25 = sshll.u32 %s1711_s24, 4  ;;  %s1793_s25 = int_to_ptr.vmem [resolvable:$true] %s154_s25 }
   0xf   : > { %s1712_s27 = smov [#allocation7]   ;;  %s1713_s29 = smov [#allocation8]  }
  0x10   : > { %s2157_s23 = scalar_select %p1789_p8, 1, 0 }
  0x11   : > { %p1394_p9 = pneg %p1789_p8  ;;  %s168_s28 = sshll.u32 %s1712_s27, 4  ;;  %s1804_s28 = int_to_ptr.vmem [resolvable:$true] %s168_s28 }
  0x12   : > { %s1806_s30 = sshll.u32 %s1713_s29, 4  ;;  %s1521_s7 = scalar_lea.hbm %s2148_s1, 1216  ;;  %s180_s30 = int_to_ptr.vmem [resolvable:$true] %s1806_s30 }
  0x13   : > { %p1800_p11 = pnand %p1394_p9, %p2152_p1  ;;  %p1522_p12 = scmp.ne.s32.totalorder %s2148_s1, %s1521_s7 }
  0x14   : > { %p1528_p5 = scmp.lt.u32.totalorder %s1521_s7, %s2148_s1 }
  0x15   : > { %p1816_p13 = pneg %p1800_p11 }
  0x17   : > { %p1524_p0 = pnand %p1816_p13, %p1522_p12 }
  0x19   : > { %p1525_p3 = pneg %p1524_p0 }
  0x1b   : > { %p1530_p7 = pnand %p1528_p5, %p1525_p3 }
  0x1d   : > { %1533 = shalt.err (!%p1530_p7)
}
  0x1e   : > { %s1534_s13 = scalar_lea.vmem %s1793_s25, 1216  ;;  %p1542_p2 = scmp.lt.s32.totalorder %s1793_s25, %s1793_s25 }
  0x1f   : > { %p1535_p9 = scmp.ne.s32.totalorder %s1793_s25, %s1534_s13  ;;  %p1543_p6 = scmp.lt.s32.totalorder %s1534_s13, %s1534_s13 }
  0x21   : > { %p1537_p10 = pnand %p1535_p9, %p1816_p13  ;;  %p1544_p12 = por %p1543_p6, %p1542_p2 }
  0x23   : > { %p1538_p1 = pneg %p1537_p10 }
  0x25   : > { %p1545_p0 = pnand %p1544_p12, %p1538_p1 }
  0x27   : > { %1548 = shalt.err (!%p1545_p0)
}
  0x28   : > { %s1714_s14 = smov 64   ;;  %s1715_s20 = smov 4  }
  0x29   : > { %1397 = dma.hbm_to_vmem [thread:$0]  (!%p1800_p11), %s2148_s1, 1216, %s1793_s25, [#allocation6], %s1714_s14, %s1714_s14, %s1715_s20  }
  0x2a   : > { %s1549_s6 = scalar_lea.hbm %s2149_s2, 16 }
  0x2b   : > { %p1550_p2 = scmp.ne.s32.totalorder %s2149_s2, %s1549_s6  ;;  %p1556_p10 = scmp.lt.u32.totalorder %s1549_s6, %s2149_s2 }
  0x2d   : > { %p1552_p1 = pnand %p1550_p2, %p1816_p13 }
  0x2f   : > { %p1553_p6 = pneg %p1552_p1 }
  0x31   : > { %p1558_p3 = pnand %p1556_p10, %p1553_p6 }
  0x33   : > { %1561 = shalt.err (!%p1558_p3)
}
  0x34   : > { %s1562_s25 = scalar_lea.vmem %s1804_s28, 16  ;;  %s1569_s12 = scalar_lea.vmem %s1804_s28, 32 }
  0x35   : > { %p1563_p5 = scmp.ne.s32.totalorder %s1804_s28, %s1562_s25  ;;  %p1570_p12 = scmp.lt.s32.totalorder %s1804_s28, %s1804_s28 }
  0x36   : > { %p1571_p0 = scmp.lt.s32.totalorder %s1569_s12, %s1562_s25 }
  0x37   : > { %p1565_p7 = pnand %p1563_p5, %p1816_p13 }
  0x38   : > { %p1572_p2 = por %p1571_p0, %p1570_p12 }
  0x39   : > { %p1566_p9 = pneg %p1565_p7 }
  0x3b   : > { %p1573_p1 = pnand %p1572_p2, %p1566_p9 }
  0x3d   : > { %1576 = shalt.err (!%p1573_p1)
}
  0x3e   : > { %1400 = dma.hbm_to_vmem [thread:$0]  (!%p1800_p11), %s2149_s2, 16, %s1804_s28, [#allocation6]  }
  0x3f   : > { %s1577_s27 = scalar_lea.hbm %s2150_s3, 16 }
  0x40   : > { %p1578_p6 = scmp.ne.s32.totalorder %s2150_s3, %s1577_s27  ;;  %p1584_p5 = scmp.lt.u32.totalorder %s1577_s27, %s2150_s3 }
  0x42   : > { %p1580_p10 = pnand %p1578_p6, %p1816_p13 }
  0x44   : > { %p1581_p3 = pneg %p1580_p10 }
  0x46   : > { %p1586_p7 = pnand %p1584_p5, %p1581_p3 }
  0x48   : > { %1589 = shalt.err (!%p1586_p7)
}
  0x49   : > { %s1590_s8 = scalar_lea.vmem %s180_s30, 16  ;;  %s1597_s28 = scalar_lea.vmem %s180_s30, 32 }
  0x4a   : > { %p1591_p9 = scmp.ne.s32.totalorder %s180_s30, %s1590_s8  ;;  %p1598_p2 = scmp.lt.s32.totalorder %s180_s30, %s180_s30 }
  0x4b   : > { %p1599_p1 = scmp.lt.s32.totalorder %s1597_s28, %s1590_s8 }
  0x4c   : > { %p1593_p12 = pnand %p1591_p9, %p1816_p13 }
  0x4d   : > { %p1600_p4 = por %p1599_p1, %p1598_p2 }
  0x4e   : > { %p1594_p0 = pneg %p1593_p12 }
  0x50   : > { %p1601_p8 = pnand %p1600_p4, %p1594_p0 }
  0x52   : > { %1604 = shalt.err (!%p1601_p8)
}
  0x53   : > { %1403 = dma.hbm_to_vmem [thread:$0]  (!%p1800_p11), %s2150_s3, 16, %s180_s30, [#allocation9]  }
  0x54   : > { %s1881_s10 = sadd.s32 1, %s1709_s18   ;;  %s29_s26 = sadd.s32 1, %s1705_s17 }
  0x55   : > { %s26_s25 = ssub.s32 %s1709_s18, %s1881_s10  ;;  %p36_p8 = scmp.ne.s32.totalorder %s1705_s17, %s1701_s16 }
  0x56   : > { %p27_p4 = scmp.eq.s32.totalorder %s26_s25, 0  ;;  %p37_p13 = scmp.eq.s32.totalorder %s1709_s18, 0 }
  0x57   : > { %p1415_p6 = scmp.lt.s32.totalorder %s1709_s18, 2  ;;  %p2160_p3 = scmp.eq.s32.totalorder %s1770_s19, 1 }
  0x58   : > { %s1891_s12 = scalar_select %p27_p4, %s1705_s17, %s29_s26  }
  0x59   : > { %p38_p10 = por %p37_p13, %p36_p8  ;;  %p1895_p5 = por %p2160_p3, %p36_p8 }
  0x5a   : > { %s190_s14 = sand.u32 1, %s1705_s17   ;;  %s1229_s20 = sshll.u32 %s1709_s18, 12 }
  0x5b   : > { %s1121_s30 = sshll.u32 %s190_s14, 8  ;;  %s1904_s29 = scalar_lea.hbm %s2147_s0, %s1229_s20 }
  0x5c   : > { %s194_s5 = scalar_lea.vmem [#allocation2], %s1121_s30  ;;  %p1906_p11 = pnand %p1415_p6, %p38_p10 }
  0x5d   : > { %s202_s6 = sshll.u32 %s194_s5, 4  ;;  %s1912_s8 = scalar_lea.sflag [#allocation3], %s190_s14  ;;  %s1910_s6 = int_to_ptr.vmem [resolvable:$true] %s202_s6 }
  0x5e   : > { %s1605_s28 = scalar_lea.hbm %s1904_s29, 4096  ;;  %p1607_p9 = pneg %p1906_p11 }
  0x5f   : > { %p1606_p7 = scmp.ne.s32.totalorder %s1904_s29, %s1605_s28  ;;  %s1610_s25 = scalar_lea.hbm %s2147_s0, 8192 }
  0x60   : > { %p1611_p2 = scmp.lt.u32.totalorder %s1904_s29, %s2147_s0  ;;  %p1612_p1 = scmp.lt.u32.totalorder %s1610_s25, %s1605_s28 }
  0x61   : > { %p1608_p12 = pnand %p1607_p9, %p1606_p7  ;;  %p1614_p8 = scmp.lt.u32.totalorder %s1605_s28, %s1904_s29 }
  0x62   : > { %p1613_p4 = por %p1612_p1, %p1611_p2 }
  0x63   : > { %p1609_p0 = pneg %p1608_p12 }
  0x64   : > { %p1615_p13 = por %p1614_p8, %p1613_p4 }
  0x66   : > { %p1616_p6 = pnand %p1615_p13, %p1609_p0 }
  0x68   : > { %1619 = shalt.err (!%p1616_p6)
}
  0x69   : > { %s1620_s14 = scalar_lea.vmem %s1910_s6, 4096  ;;  %s1716_s30 = smov [#allocation2]  }
  0x6a   : > { %p1621_p10 = scmp.ne.s32.totalorder %s1910_s6, %s1620_s14  ;;  %s1625_s24 = sshll.u32 %s1716_s30, 4  ;;  %s1626_s24 = int_to_ptr.vmem [resolvable:$false] %s1625_s24 }
  0x6b   : > { %s1627_s27 = scalar_lea.vmem %s1626_s24, 8192  ;;  %p1628_p12 = scmp.lt.s32.totalorder %s1910_s6, %s1626_s24 }
  0x6c   : > { %p1623_p3 = pnand %p1621_p10, %p1607_p9  ;;  %p1629_p2 = scmp.lt.s32.totalorder %s1627_s27, %s1620_s14 }
  0x6e   : > { %p1624_p7 = pneg %p1623_p3  ;;  %p1630_p1 = por %p1629_p2, %p1628_p12 }
  0x70   : > { %p1631_p4 = pnand %p1630_p1, %p1624_p7 }
  0x72   : > { %1634 = shalt.err (!%p1631_p4)
}
  0x73   : > { %s1717_s5 = smov 128   ;;  %s1718_s28 = smov 8  }
  0x74   : > { %1407 = dma.hbm_to_vmem [thread:$0]  (!%p1906_p11), %s1904_s29, 4096, %s1910_s6, %s1912_s8, %s1717_s5, %s1717_s5, %s1718_s28  }
  0x75   : > { %p2163_p9 = scmp.ne.s32.totalorder %s2157_s23, 0 }
  0x76   : > { %s1943_s9 = sand.u32 (!%p2163_p9), 1, %s1701_s16   ;;  %p2164_p0 = scmp.ne.s32.totalorder (!%p2163_p9), %s2155_s21, 0 }
  0x77   : > { %214 = sbr.rel (%p2163_p9) target bundleno = 469 (0x1d5), region = 36  ;;  %s1126_s11 = sshll.u32 (!%p2163_p9), %s1943_s9, 8 }
  0x78   : > { %s217_s25 = scalar_lea.sflag (!%p2163_p9), [#allocation3], %s1943_s9  ;;  %s1947_s26 = scalar_lea.vmem (!%p2163_p9), [#allocation2], %s1126_s11 }
  0x7e   : > { %1680 = dma.done.wait (%p2164_p0), %s217_s25, 4096  }
  0x7f   : > { %1682 = vsyncadd (%p2164_p0), %s217_s25, 4294963200  ;;  %p2165_p11 = scmp.eq.s32.totalorder %s1770_s19, 0 }
  0x81   : > { %1684 = dma.done.wait (%p2165_p11), [#allocation6], 1232   ;;  %p2166_p8 = pmov %p2165_p11 }
  0x83   : > { %1686 = vsyncadd (%p2166_p8), [#allocation6], 4294966064  ;;  %p2167_p13 = pmov %p2166_p8 }
  0x84   : > { %p2168_p6 = pmov %p2166_p8 }
  0x85   : > { %1688 = dma.done.wait (%p2167_p13), [#allocation9], 16  }
  0x86   : > { %1690 = vsyncadd (%p2168_p6), [#allocation9], 4294967280  ;;  %v1719_v0 = vmov 0   ;;  %v1463_v1 = vld [vmem:[#allocation5] sm:$0xff]   ;;  %v1464_v2 = vld [vmem:[#allocation5 + $0x8] sm:$0xff]   ;;  %vm512_vm0 = vcmask 154624  }
  0x87   : > { %568 = vmatprep.subr.bf16.mxu0 %v1719_v0  ;;  %1358 = vmatprep.subr.bf16.mxu1 %v1719_v0  ;;  %v1465_v3 = vld [vmem:[#allocation5 + $0x10] sm:$0xff]   ;;  %v1466_v4 = vld [vmem:[#allocation5 + $0x18] sm:$0xff]   ;;  %v1475_v5 = vld [vmem:[%s1947_s26 + $0x4] ss:$8 sps:$4 sm:$0xff]   ;;  %vm561_vm1 = vcmask 1040384   ;;  %vm562_vm2 = vcmask 1041408  }
  0x88   : > { %569 = vmatpush1.bf16.msra.mxu0 %v1463_v1  ;;  %1368 = vmatpush1.bf16.msra.mxu1 %v1463_v1  ;;  %v1478_v6 = vld [vmem:[%s1947_s26 + $0x84] ss:$8 sps:$4 sm:$0xff]   ;;  %v1469_v9 = vld [vmem:[#allocation5 + $0x30] sm:$0xff]   ;;  %v1470_v10 = vld [vmem:[#allocation5 + $0x38] sm:$0xff]   ;;  %v1720_v11 = vmov 65535   ;;  %s1130_s21 = sshll.u32 %s1943_s9, 7 }
  0x89   : > { %570 = vmatprep.subr.bf16.mxu0 %v1719_v0  ;;  %1359 = vmatprep.subr.bf16.mxu1 %v1719_v0  ;;  %v1467_v7 = vld [vmem:[#allocation5 + $0x20] sm:$0xff]   ;;  %v1468_v8 = vld [vmem:[#allocation5 + $0x28] sm:$0xff]   ;;  %v563_v12 = vsel %vm561_vm1, 4294967295, %v1720_v11  ;;  %v1479_v19 = vld [vmem:[%s1947_s26 + $0x14] ss:$8 sps:$4 sm:$0xff]   ;;  %s2024_s23 = scalar_lea.vmem [#allocation10], %s1130_s21 }
  0x8a   : > { %1173 = vmatprep.mubr.msk.bf16.mxu0 %vm512_vm0, %v1475_v5  ;;  %1181 = vmatprep.mubr.msk.bf16.mxu1 %vm512_vm0, %v1478_v6  ;;  %v1471_v13 = vld [vmem:[#allocation5 + $0x40] sm:$0xff]   ;;  %v1472_v14 = vld [vmem:[#allocation5 + $0x48] ss:$0 sps:$4 sm:$0x33]   ;;  %v564_v15 = vsel %vm562_vm2, %v563_v12, 0  ;;  %s1262_s29 = sshll.u32 %s1770_s19, 11 }
  0x8b   : > { %v566_v16 = vand.u32 %v1472_v14, %v564_v15  ;;  %v1473_v17 = vld [vmem:[%s1947_s26] ss:$8 sps:$4 sm:$0xff]   ;;  %v1481_v20 = vld [vmem:[%s1947_s26 + $0x94] ss:$8 sps:$4 sm:$0xff]   ;;  %v1483_v21 = vld [vmem:[%s1947_s26 + $0x10] ss:$8 sps:$4 sm:$0xff]   ;;  %s2099_s20 = scalar_lea.hbm %s2151_s4, %s1262_s29 }
  0x8c   : > { %571 = vmatpush1.bf16.msra.mxu0 %v1464_v2  ;;  %1369 = vmatpush1.bf16.msra.mxu1 %v1464_v2  ;;  %v1476_v18 = vld [vmem:[%s1947_s26 + $0x80] ss:$8 sps:$4 sm:$0xff]   ;;  %v1484_v22 = vld [vmem:[%s1947_s26 + $0x90] ss:$8 sps:$4 sm:$0xff]   ;;  %v1485_v23 = vld [vmem:[%s1947_s26 + $0x24] ss:$8 sps:$4 sm:$0xff]  }
  0x8d   : > { %572 = vmatprep.subr.bf16.mxu0 %v1719_v0  ;;  %1360 = vmatprep.subr.bf16.mxu1 %v1719_v0  ;;  %v1487_v24 = vld [vmem:[%s1947_s26 + $0xa4] ss:$8 sps:$4 sm:$0xff]   ;;  %v1489_v25 = vld [vmem:[%s1947_s26 + $0x20] ss:$8 sps:$4 sm:$0xff]   ;;  %v1491_v27 = vld [vmem:[%s1947_s26 + $0x34] ss:$8 sps:$4 sm:$0xff]  }
  0x8e   : > { %v1490_v26 = vld [vmem:[%s1947_s26 + $0xa0] ss:$8 sps:$4 sm:$0xff]   ;;  %v1493_v28 = vld [vmem:[%s1947_s26 + $0xb4] ss:$8 sps:$4 sm:$0xff]   ;;  %v1495_v29 = vld [vmem:[%s1947_s26 + $0x30] ss:$8 sps:$4 sm:$0xff]  }
  0x8f   : > { %v1496_v30 = vld [vmem:[%s1947_s26 + $0xb0] ss:$8 sps:$4 sm:$0xff]   ;;  %v1497_v31 = vld [vmem:[%s1947_s26 + $0x44] ss:$8 sps:$4 sm:$0xff]   ;;  %v1501_v33 = vld [vmem:[%s1947_s26 + $0x40] ss:$8 sps:$4 sm:$0xff]  }
  0x90   : > { %573 = vmatpush1.bf16.msra.mxu0 %v1465_v3  ;;  %1370 = vmatpush1.bf16.msra.mxu1 %v1465_v3  ;;  %v1499_v32 = vld [vmem:[%s1947_s26 + $0xc4] ss:$8 sps:$4 sm:$0xff]   ;;  %v1502_v34 = vld [vmem:[%s1947_s26 + $0xc0] ss:$8 sps:$4 sm:$0xff]   ;;  %v1503_v35 = vld [vmem:[%s1947_s26 + $0x54] ss:$8 sps:$4 sm:$0xff]  }
  0x91   : > { %574 = vmatprep.subr.bf16.mxu0 %v1719_v0  ;;  %1361 = vmatprep.subr.bf16.mxu1 %v1719_v0  ;;  %v1505_v36 = vld [vmem:[%s1947_s26 + $0xd4] ss:$8 sps:$4 sm:$0xff]   ;;  %v1507_v37 = vld [vmem:[%s1947_s26 + $0x50] ss:$8 sps:$4 sm:$0xff]   ;;  %v1509_v39 = vld [vmem:[%s1947_s26 + $0x64] ss:$8 sps:$4 sm:$0xff]  }
  0x92   : > { %v1508_v38 = vld [vmem:[%s1947_s26 + $0xd0] ss:$8 sps:$4 sm:$0xff]   ;;  %v1511_v40 = vld [vmem:[%s1947_s26 + $0xe4] ss:$8 sps:$4 sm:$0xff]   ;;  %v1513_v41 = vld [vmem:[%s1947_s26 + $0x60] ss:$8 sps:$4 sm:$0xff]  }
  0x93   : > { %v1514_v42 = vld [vmem:[%s1947_s26 + $0xe0] ss:$8 sps:$4 sm:$0xff]   ;;  %v1515_v43 = vld [vmem:[%s1947_s26 + $0x74] ss:$8 sps:$4 sm:$0xff]   ;;  %v1519_v45 = vld [vmem:[%s1947_s26 + $0x70] ss:$8 sps:$4 sm:$0xff]  }
  0x94   : > { %575 = vmatpush1.bf16.msra.mxu0 %v1466_v4  ;;  %1371 = vmatpush1.bf16.msra.mxu1 %v1466_v4  ;;  %v1517_v44 = vld [vmem:[%s1947_s26 + $0xf4] ss:$8 sps:$4 sm:$0xff]   ;;  %v1520_v46 = vld [vmem:[%s1947_s26 + $0xf0] ss:$8 sps:$4 sm:$0xff]   ;;  %v2009_v47 = vld [vmem:[#allocation7] ss:$0 sm:$0xff] }
  0x95   : > { %576 = vmatprep.subr.bf16.mxu0 %v1719_v0  ;;  %1362 = vmatprep.subr.bf16.mxu1 %v1719_v0  ;;  %v2011_v49 = vld [vmem:[#allocation8] ss:$0 sm:$0xff]  ;;  %s1013_s6 = sshll.u32 %s2024_s23, 4  ;;  %s1000_s19 = scalar_lea.sflag [#allocation4], %s1943_s9  ;;  %s2101_s6 = int_to_ptr.vmem [resolvable:$true] %s1013_s6 }
  0x96   : > { %s1635_s14 = scalar_lea.vmem %s2101_s6, 2048  ;;  %s1721_s30 = smov [#allocation10]  }
  0x97   : > { %p1636_p10 = scmp.ne.s32.totalorder %s2101_s6, %s1635_s14  ;;  %s1639_s24 = sshll.u32 %s1721_s30, 4  ;;  %s1640_s24 = int_to_ptr.vmem [resolvable:$false] %s1639_s24 }
  0x98   : > { %577 = vmatpush1.bf16.msra.mxu0 %v1467_v7  ;;  %1372 = vmatpush1.bf16.msra.mxu1 %v1467_v7  ;;  %s1641_s27 = scalar_lea.vmem %s1640_s24, 4096  ;;  %p1642_p12 = scmp.lt.s32.totalorder %s2101_s6, %s1640_s24 }
  0x99   : > { %578 = vmatprep.subr.bf16.mxu0 %v1719_v0  ;;  %1363 = vmatprep.subr.bf16.mxu1 %v1719_v0  ;;  %p1637_p3 = pnand %p1636_p10, %p1895_p5  ;;  %p1643_p2 = scmp.lt.s32.totalorder %s1641_s27, %s1635_s14 }
  0x9b   : > { %p1638_p7 = pneg %p1637_p3  ;;  %p1644_p1 = por %p1643_p2, %p1642_p12 }
  0x9c   : > { %579 = vmatpush1.bf16.msra.mxu0 %v1468_v8  ;;  %1373 = vmatpush1.bf16.msra.mxu1 %v1468_v8 }
  0x9d   : > { %580 = vmatprep.subr.bf16.mxu0 %v1719_v0  ;;  %1364 = vmatprep.subr.bf16.mxu1 %v1719_v0  ;;  %p1645_p4 = pnand %p1644_p1, %p1638_p7 }
  0xa0   : > { %581 = vmatpush1.bf16.msra.mxu0 %v1469_v9  ;;  %1374 = vmatpush1.bf16.msra.mxu1 %v1469_v9 }
  0xa1   : > { %582 = vmatprep.subr.bf16.mxu0 %v1719_v0  ;;  %1365 = vmatprep.subr.bf16.mxu1 %v1719_v0 }
  0xa4   : > { %583 = vmatpush1.bf16.msra.mxu0 %v1470_v10  ;;  %1375 = vmatpush1.bf16.msra.mxu1 %v1470_v10 }
  0xa5   : > { %584 = vmatprep.subr.bf16.mxu0 %v1719_v0  ;;  %1366 = vmatprep.subr.bf16.mxu1 %v1719_v0 }
  0xa8   : > { %585 = vmatpush1.bf16.msra.mxu0 %v1471_v13  ;;  %1376 = vmatpush1.bf16.msra.mxu1 %v1471_v13 }
  0xa9   : > { %586 = vmatprep.subr.bf16.mxu0 %v1719_v0  ;;  %1367 = vmatprep.subr.bf16.mxu1 %v1719_v0 }
  0xac   : > { %587 = vmatpush1.bf16.msra.mxu0 %v566_v16  ;;  %1377 = vmatpush1.bf16.msra.mxu1 %v566_v16 }
  0xaf   : > { %601 = vmatmul.mubr.bf16.vlgmr.msra.gmra.mrb[0].mxu0 %v1473_v17  ;;  %665 = vmatmul.mubr.bf16.vlgmr.msra.gmra.mrb[0].mxu1 %v1476_v18 }
  0xb0   : > { %1174 = vmatprep.mubr.msk.bf16.mxu0 %vm512_vm0, %v1479_v19  ;;  %1182 = vmatprep.mubr.msk.bf16.mxu1 %vm512_vm0, %v1481_v20 }
  0xb7   : > { %609 = vmatmul.mubr.bf16.gmra.mrb[4].mxu0 %v1483_v21  ;;  %673 = vmatmul.mubr.bf16.gmra.mrb[4].mxu1 %v1484_v22 }
  0xb8   : > { %1175 = vmatprep.mubr.msk.bf16.mxu0 %vm512_vm0, %v1485_v23  ;;  %1183 = vmatprep.mubr.msk.bf16.mxu1 %vm512_vm0, %v1487_v24 }
  0xbf   : > { %617 = vmatmul.mubr.bf16.gmra.mrb[8].mxu0 %v1489_v25  ;;  %681 = vmatmul.mubr.bf16.gmra.mrb[8].mxu1 %v1490_v26 }
  0xc0   : > { %1176 = vmatprep.mubr.msk.bf16.mxu0 %vm512_vm0, %v1491_v27  ;;  %1184 = vmatprep.mubr.msk.bf16.mxu1 %vm512_vm0, %v1493_v28 }
  0xc7   : > { %625 = vmatmul.mubr.bf16.gmra.mrb[12].mxu0 %v1495_v29  ;;  %689 = vmatmul.mubr.bf16.gmra.mrb[12].mxu1 %v1496_v30 }
  0xc8   : > { %1177 = vmatprep.mubr.msk.bf16.mxu0 %vm512_vm0, %v1497_v31  ;;  %1185 = vmatprep.mubr.msk.bf16.mxu1 %vm512_vm0, %v1499_v32 }
  0xcf   : > { %633 = vmatmul.mubr.bf16.gmra.mrb[16].mxu0 %v1501_v33  ;;  %697 = vmatmul.mubr.bf16.gmra.mrb[16].mxu1 %v1502_v34 }
  0xd0   : > { %1178 = vmatprep.mubr.msk.bf16.mxu0 %vm512_vm0, %v1503_v35  ;;  %1186 = vmatprep.mubr.msk.bf16.mxu1 %vm512_vm0, %v1505_v36 }
  0xd7   : > { %641 = vmatmul.mubr.bf16.gmra.mrb[20].mxu0 %v1507_v37  ;;  %705 = vmatmul.mubr.bf16.gmra.mrb[20].mxu1 %v1508_v38 }
  0xd8   : > { %1179 = vmatprep.mubr.msk.bf16.mxu0 %vm512_vm0, %v1509_v39  ;;  %1187 = vmatprep.mubr.msk.bf16.mxu1 %vm512_vm0, %v1511_v40 }
  0xdf   : > { %649 = vmatmul.mubr.bf16.gmra.mrb[24].mxu0 %v1513_v41  ;;  %713 = vmatmul.mubr.bf16.gmra.mrb[24].mxu1 %v1514_v42 }
  0xe0   : > { %1180 = vmatprep.mubr.msk.bf16.mxu0 %vm512_vm0, %v1515_v43  ;;  %1188 = vmatprep.mubr.msk.bf16.mxu1 %vm512_vm0, %v1517_v44 }
  0xe7   : > { %657 = vmatmul.mubr.bf16.gmra.mrb[28].mxu0 %v1519_v45  ;;  %721 = vmatmul.mubr.bf16.gmra.mrb[28].mxu1 %v1520_v46 }
 0x182   : > { %v602_v48 = vpop.f32.mrb[0].mxu0  ;;  %v666_v50 = vpop.f32.mrb[0].mxu1 }
 0x183   : > { %v736_v51 = vmul.f32 %v2009_v47, %v602_v48  ;;  %v752_v52 = vmul.f32 %v2009_v47, %v666_v50  ;;  %v604_v53 = vpop.f32.mrb[1].mxu0  ;;  %v668_v54 = vpop.f32.mrb[1].mxu1 }
 0x184   : > { %v605_v55 = vpop.f32.mrb[2].mxu0  ;;  %v669_v56 = vpop.f32.mrb[2].mxu1 }
 0x185   : > { %v775_v57 = vadd.f32 %v2011_v49, %v736_v51  ;;  %v791_v58 = vadd.f32 %v2011_v49, %v752_v52  ;;  %v737_v59 = vmul.f32 %v2009_v47, %v605_v55  ;;  %v753_v60 = vmul.f32 %v2009_v47, %v669_v56  ;;  %v607_v61 = vpop.f32.mrb[3].mxu0  ;;  %v671_v62 = vpop.f32.mrb[3].mxu1 }
 0x187   : > { %v776_v63 = vadd.f32 %v2011_v49, %v737_v59  ;;  %v792_v0 = vadd.f32 %v2011_v49, %v753_v60  ;;  %v807_v1 = vmax.f32 %v775_v57, 0.0  ;;  %v823_v2 = vmax.f32 %v791_v58, 0.0 }
 0x189   : > { %v808_v3 = vmax.f32 %v776_v63, 0.0  ;;  %v824_v4 = vmax.f32 %v792_v0, 0.0 }
 0x18a   : > { %v610_v5 = vpop.f32.mrb[4].mxu0  ;;  %v674_v6 = vpop.f32.mrb[4].mxu1 }
 0x18b   : > { %v1266_v7 = vpack.c.bf16 %v808_v3, %v807_v1  ;;  %v1306_v8 = vpack.c.bf16 %v824_v4, %v823_v2  ;;  %v738_v9 = vmul.f32 %v2009_v47, %v610_v5  ;;  %v754_v10 = vmul.f32 %v2009_v47, %v674_v6  ;;  %v612_v11 = vpop.f32.mrb[5].mxu0  ;;  %v676_v12 = vpop.f32.mrb[5].mxu1 }
 0x18c   : > { %v613_v13 = vpop.f32.mrb[6].mxu0  ;;  %v677_v14 = vpop.f32.mrb[6].mxu1 }
 0x18d   : > { %1267 = vst [vmem:[%s2024_s23] sm:$0xff] %v1266_v7   ;;  %1350 = vst [vmem:[%s2024_s23 + $0x40] sm:$0xff] %v1306_v8   ;;  %v777_v15 = vadd.f32 %v2011_v49, %v738_v9  ;;  %v793_v16 = vadd.f32 %v2011_v49, %v754_v10  ;;  %v739_v17 = vmul.f32 %v2009_v47, %v613_v13  ;;  %v615_v19 = vpop.f32.mrb[7].mxu0  ;;  %v679_v20 = vpop.f32.mrb[7].mxu1 }
 0x18e   : > { %v755_v18 = vmul.f32 %v2009_v47, %v677_v14 }
 0x18f   : > { %v778_v21 = vadd.f32 %v2011_v49, %v739_v17  ;;  %v809_v23 = vmax.f32 %v777_v15, 0.0  ;;  %v825_v24 = vmax.f32 %v793_v16, 0.0 }
 0x190   : > { %v794_v22 = vadd.f32 %v2011_v49, %v755_v18 }
 0x191   : > { %v810_v25 = vmax.f32 %v778_v21, 0.0 }
 0x192   : > { %v826_v26 = vmax.f32 %v794_v22, 0.0  ;;  %v618_v27 = vpop.f32.mrb[8].mxu0  ;;  %v682_v28 = vpop.f32.mrb[8].mxu1 }
 0x193   : > { %v1271_v29 = vpack.c.bf16 %v810_v25, %v809_v23  ;;  %v740_v31 = vmul.f32 %v2009_v47, %v618_v27  ;;  %v756_v32 = vmul.f32 %v2009_v47, %v682_v28  ;;  %v620_v33 = vpop.f32.mrb[9].mxu0  ;;  %v684_v34 = vpop.f32.mrb[9].mxu1 }
 0x194   : > { %v1311_v30 = vpack.c.bf16 %v826_v26, %v825_v24  ;;  %v621_v35 = vpop.f32.mrb[10].mxu0  ;;  %v685_v36 = vpop.f32.mrb[10].mxu1 }
 0x195   : > { %1343 = vst [vmem:[%s2024_s23 + $0x8] sm:$0xff] %v1271_v29   ;;  %v779_v37 = vadd.f32 %v2011_v49, %v740_v31  ;;  %v795_v38 = vadd.f32 %v2011_v49, %v756_v32  ;;  %v741_v39 = vmul.f32 %v2009_v47, %v621_v35  ;;  %v757_v40 = vmul.f32 %v2009_v47, %v685_v36  ;;  %v623_v41 = vpop.f32.mrb[11].mxu0  ;;  %v687_v42 = vpop.f32.mrb[11].mxu1 }
 0x196   : > { %1351 = vst [vmem:[%s2024_s23 + $0x48] sm:$0xff] %v1311_v30  }
 0x197   : > { %v780_v43 = vadd.f32 %v2011_v49, %v741_v39  ;;  %v796_v44 = vadd.f32 %v2011_v49, %v757_v40  ;;  %v811_v45 = vmax.f32 %v779_v37, 0.0  ;;  %v827_v46 = vmax.f32 %v795_v38, 0.0 }
 0x199   : > { %v812_v48 = vmax.f32 %v780_v43, 0.0  ;;  %v828_v50 = vmax.f32 %v796_v44, 0.0 }
 0x19a   : > { %v626_v51 = vpop.f32.mrb[12].mxu0  ;;  %v690_v52 = vpop.f32.mrb[12].mxu1 }
 0x19b   : > { %v1276_v53 = vpack.c.bf16 %v812_v48, %v811_v45  ;;  %v1316_v54 = vpack.c.bf16 %v828_v50, %v827_v46  ;;  %v742_v55 = vmul.f32 %v2009_v47, %v626_v51  ;;  %v758_v56 = vmul.f32 %v2009_v47, %v690_v52  ;;  %v628_v57 = vpop.f32.mrb[13].mxu0  ;;  %v692_v58 = vpop.f32.mrb[13].mxu1 }
 0x19c   : > { %v629_v59 = vpop.f32.mrb[14].mxu0  ;;  %v693_v60 = vpop.f32.mrb[14].mxu1 }
 0x19d   : > { %1344 = vst [vmem:[%s2024_s23 + $0x10] sm:$0xff] %v1276_v53   ;;  %1352 = vst [vmem:[%s2024_s23 + $0x50] sm:$0xff] %v1316_v54   ;;  %v781_v61 = vadd.f32 %v2011_v49, %v742_v55  ;;  %v797_v62 = vadd.f32 %v2011_v49, %v758_v56  ;;  %v743_v63 = vmul.f32 %v2009_v47, %v629_v59  ;;  %v631_v1 = vpop.f32.mrb[15].mxu0  ;;  %v695_v2 = vpop.f32.mrb[15].mxu1 }
 0x19e   : > { %v759_v0 = vmul.f32 %v2009_v47, %v693_v60 }
 0x19f   : > { %v782_v3 = vadd.f32 %v2011_v49, %v743_v63  ;;  %v813_v5 = vmax.f32 %v781_v61, 0.0  ;;  %v829_v6 = vmax.f32 %v797_v62, 0.0 }
 0x1a0   : > { %v798_v4 = vadd.f32 %v2011_v49, %v759_v0 }
 0x1a1   : > { %v814_v7 = vmax.f32 %v782_v3, 0.0 }
 0x1a2   : > { %v830_v8 = vmax.f32 %v798_v4, 0.0  ;;  %v634_v9 = vpop.f32.mrb[16].mxu0  ;;  %v698_v10 = vpop.f32.mrb[16].mxu1 }
 0x1a3   : > { %v1281_v11 = vpack.c.bf16 %v814_v7, %v813_v5  ;;  %v744_v13 = vmul.f32 %v2009_v47, %v634_v9  ;;  %v760_v14 = vmul.f32 %v2009_v47, %v698_v10  ;;  %v636_v15 = vpop.f32.mrb[17].mxu0  ;;  %v700_v16 = vpop.f32.mrb[17].mxu1 }
 0x1a4   : > { %v1321_v12 = vpack.c.bf16 %v830_v8, %v829_v6  ;;  %v637_v17 = vpop.f32.mrb[18].mxu0  ;;  %v701_v18 = vpop.f32.mrb[18].mxu1 }
 0x1a5   : > { %1345 = vst [vmem:[%s2024_s23 + $0x18] sm:$0xff] %v1281_v11   ;;  %v783_v19 = vadd.f32 %v2011_v49, %v744_v13  ;;  %v799_v20 = vadd.f32 %v2011_v49, %v760_v14  ;;  %v745_v21 = vmul.f32 %v2009_v47, %v637_v17  ;;  %v761_v22 = vmul.f32 %v2009_v47, %v701_v18  ;;  %v639_v23 = vpop.f32.mrb[19].mxu0  ;;  %v703_v24 = vpop.f32.mrb[19].mxu1 }
 0x1a6   : > { %1353 = vst [vmem:[%s2024_s23 + $0x58] sm:$0xff] %v1321_v12  }
 0x1a7   : > { %v784_v25 = vadd.f32 %v2011_v49, %v745_v21  ;;  %v800_v26 = vadd.f32 %v2011_v49, %v761_v22  ;;  %v815_v27 = vmax.f32 %v783_v19, 0.0  ;;  %v831_v28 = vmax.f32 %v799_v20, 0.0 }
 0x1a9   : > { %v816_v29 = vmax.f32 %v784_v25, 0.0  ;;  %v832_v30 = vmax.f32 %v800_v26, 0.0 }
 0x1aa   : > { %v642_v31 = vpop.f32.mrb[20].mxu0  ;;  %v706_v32 = vpop.f32.mrb[20].mxu1 }
 0x1ab   : > { %v1286_v33 = vpack.c.bf16 %v816_v29, %v815_v27  ;;  %v1326_v34 = vpack.c.bf16 %v832_v30, %v831_v28  ;;  %v746_v35 = vmul.f32 %v2009_v47, %v642_v31  ;;  %v762_v36 = vmul.f32 %v2009_v47, %v706_v32  ;;  %v644_v37 = vpop.f32.mrb[21].mxu0  ;;  %v708_v38 = vpop.f32.mrb[21].mxu1 }
 0x1ac   : > { %v645_v39 = vpop.f32.mrb[22].mxu0  ;;  %v709_v40 = vpop.f32.mrb[22].mxu1 }
 0x1ad   : > { %1346 = vst [vmem:[%s2024_s23 + $0x20] sm:$0xff] %v1286_v33   ;;  %1354 = vst [vmem:[%s2024_s23 + $0x60] sm:$0xff] %v1326_v34   ;;  %v785_v41 = vadd.f32 %v2011_v49, %v746_v35  ;;  %v801_v42 = vadd.f32 %v2011_v49, %v762_v36  ;;  %v747_v43 = vmul.f32 %v2009_v47, %v645_v39  ;;  %v647_v45 = vpop.f32.mrb[23].mxu0  ;;  %v711_v46 = vpop.f32.mrb[23].mxu1 }
 0x1ae   : > { %v763_v44 = vmul.f32 %v2009_v47, %v709_v40 }
 0x1af   : > { %v786_v48 = vadd.f32 %v2011_v49, %v747_v43  ;;  %v817_v51 = vmax.f32 %v785_v41, 0.0  ;;  %v833_v52 = vmax.f32 %v801_v42, 0.0 }
 0x1b0   : > { %v802_v50 = vadd.f32 %v2011_v49, %v763_v44 }
 0x1b1   : > { %v818_v53 = vmax.f32 %v786_v48, 0.0 }
 0x1b2   : > { %v834_v54 = vmax.f32 %v802_v50, 0.0  ;;  %v650_v55 = vpop.f32.mrb[24].mxu0  ;;  %v714_v56 = vpop.f32.mrb[24].mxu1 }
 0x1b3   : > { %v1291_v57 = vpack.c.bf16 %v818_v53, %v817_v51  ;;  %v748_v59 = vmul.f32 %v2009_v47, %v650_v55  ;;  %v764_v60 = vmul.f32 %v2009_v47, %v714_v56  ;;  %v652_v61 = vpop.f32.mrb[25].mxu0  ;;  %v716_v62 = vpop.f32.mrb[25].mxu1 }
 0x1b4   : > { %v1331_v58 = vpack.c.bf16 %v834_v54, %v833_v52  ;;  %v653_v63 = vpop.f32.mrb[26].mxu0  ;;  %v717_v0 = vpop.f32.mrb[26].mxu1 }
 0x1b5   : > { %1347 = vst [vmem:[%s2024_s23 + $0x28] sm:$0xff] %v1291_v57   ;;  %v787_v1 = vadd.f32 %v2011_v49, %v748_v59  ;;  %v803_v2 = vadd.f32 %v2011_v49, %v764_v60  ;;  %v749_v3 = vmul.f32 %v2009_v47, %v653_v63  ;;  %v765_v4 = vmul.f32 %v2009_v47, %v717_v0  ;;  %v655_v5 = vpop.f32.mrb[27].mxu0  ;;  %v719_v6 = vpop.f32.mrb[27].mxu1 }
 0x1b6   : > { %1355 = vst [vmem:[%s2024_s23 + $0x68] sm:$0xff] %v1331_v58  }
 0x1b7   : > { %v788_v7 = vadd.f32 %v2011_v49, %v749_v3  ;;  %v804_v8 = vadd.f32 %v2011_v49, %v765_v4  ;;  %v819_v9 = vmax.f32 %v787_v1, 0.0  ;;  %v835_v10 = vmax.f32 %v803_v2, 0.0 }
 0x1b9   : > { %v820_v11 = vmax.f32 %v788_v7, 0.0  ;;  %v836_v12 = vmax.f32 %v804_v8, 0.0 }
 0x1ba   : > { %v658_v13 = vpop.f32.mrb[28].mxu0  ;;  %v722_v14 = vpop.f32.mrb[28].mxu1 }
 0x1bb   : > { %v1296_v15 = vpack.c.bf16 %v820_v11, %v819_v9  ;;  %v1336_v16 = vpack.c.bf16 %v836_v12, %v835_v10  ;;  %v750_v17 = vmul.f32 %v2009_v47, %v658_v13  ;;  %v766_v18 = vmul.f32 %v2009_v47, %v722_v14  ;;  %v660_v19 = vpop.f32.mrb[29].mxu0  ;;  %v724_v20 = vpop.f32.mrb[29].mxu1 }
 0x1bc   : > { %v661_v21 = vpop.f32.mrb[30].mxu0  ;;  %v725_v22 = vpop.f32.mrb[30].mxu1 }
 0x1bd   : > { %1348 = vst [vmem:[%s2024_s23 + $0x30] sm:$0xff] %v1296_v15   ;;  %1356 = vst [vmem:[%s2024_s23 + $0x70] sm:$0xff] %v1336_v16   ;;  %v789_v23 = vadd.f32 %v2011_v49, %v750_v17  ;;  %v805_v24 = vadd.f32 %v2011_v49, %v766_v18  ;;  %v751_v25 = vmul.f32 %v2009_v47, %v661_v21  ;;  %v663_v27 = vpop.f32.mrb[31].mxu0  ;;  %v727_v28 = vpop.f32.mrb[31].mxu1 }
 0x1be   : > { %v767_v26 = vmul.f32 %v2009_v47, %v725_v22 }
 0x1bf   : > { %v790_v29 = vadd.f32 %v2011_v49, %v751_v25  ;;  %v821_v31 = vmax.f32 %v789_v23, 0.0  ;;  %v837_v32 = vmax.f32 %v805_v24, 0.0 }
 0x1c0   : > { %v806_v30 = vadd.f32 %v2011_v49, %v767_v26 }
 0x1c1   : > { %v822_v33 = vmax.f32 %v790_v29, 0.0 }
 0x1c2   : > { %v838_v34 = vmax.f32 %v806_v30, 0.0 }
 0x1c3   : > { %v1301_v47 = vpack.c.bf16 %v822_v33, %v821_v31 }
 0x1c4   : > { %v1341_v35 = vpack.c.bf16 %v838_v34, %v837_v32 }
 0x1c5   : > { %1349 = vst [vmem:[%s2024_s23 + $0x38] sm:$0xff] %v1301_v47  }
 0x1c6   : > { %1357 = vst [vmem:[%s2024_s23 + $0x78] sm:$0xff] %v1341_v35  }
 0x1c7   : > { %1648 = shalt.err (!%p1645_p4)
}
 0x1c8   : > { %s1649_s5 = scalar_lea.hbm %s2099_s20, 2048  ;;  %s1653_s25 = scalar_lea.hbm %s2151_s4, 4096 }
 0x1c9   : > { %p1650_p9 = scmp.ne.s32.totalorder %s2099_s20, %s1649_s5  ;;  %p1654_p8 = scmp.lt.u32.totalorder %s2099_s20, %s2151_s4 }
 0x1ca   : > { %p1655_p13 = scmp.lt.u32.totalorder %s1653_s25, %s1649_s5  ;;  %p1657_p10 = scmp.lt.u32.totalorder %s1649_s5, %s2099_s20 }
 0x1cb   : > { %p1651_p0 = pnand %p1650_p9, %p1895_p5 }
 0x1cc   : > { %p1656_p6 = por %p1655_p13, %p1654_p8 }
 0x1cd   : > { %p1652_p11 = pneg %p1651_p0 }
 0x1ce   : > { %p1658_p3 = por %p1657_p10, %p1656_p6 }
 0x1d0   : > { %p1659_p7 = pnand %p1658_p3, %p1652_p11 }
 0x1d2   : > { %1662 = shalt.err (!%p1659_p7)
}
 0x1d3   : > { %s1722_s23 = smov 64   ;;  %s1723_s29 = smov 4  }
 0x1d4   : > { %1392 = dma.vmem_to_hbm [thread:$0]  (%p1895_p5), %s2101_s6, 2048, %s2099_s20, %s1000_s19, %s1722_s23, %s1722_s23, %s1723_s29  }
 0x1d5 PF: > { %s1028_s7 = sand.u32 1, %s1697_s15   ;;  %p2169_p12 = scmp.ne.s32.totalorder %s2156_s22, 0 }
 0x1d6   : > { %p2170_p2 = scmp.ge.s32.totalorder %s1709_s18, 2  ;;  %s1029_s8 = scalar_lea.sflag [#allocation4], %s1028_s7 }
 0x1d8   : > { %p1409_p1 = pnand %p2170_p2, %p2169_p12 }
 0x1da   : > { %1692 = dma.done.wait (!%p1409_p1), %s1029_s8, 2048  }
 0x1db   : > { %1694 = vsyncadd (!%p1409_p1), %s1029_s8, 4294965248  ;;  %p19_p4 = scmp.ge.s32.totalorder %s1881_s10, 4   ;;  %s2171_s15 = smov %s1701_s16 }
 0x1dc   : > { %s2172_s16 = smov %s1705_s17  ;;  %s2173_s17 = smov %s1891_s12 }
 0x1dd   : > { %s2174_s18 = smov %s1881_s10  ;;  %21 = sbr.rel (!%p19_p4) target bundleno = 7 (0x7), region = 93 }
 0x1e4   :  { %1034 = vsyncpa [#allocation3], 1 }
 0x1e5   :  { %1036 = vsyncpa [#allocation3 + $0x1], 1 }
 0x1e6   :  { %1037 = vsyncpa [#allocation6], 1 }
 0x1e7   :  { %1038 = vsyncpa [#allocation9], 1 }
 0x1e8   :  { %1039 = vsyncpa [#allocation4], 1 }
 0x1e9   :  { %1041 = vsyncpa [#allocation4 + $0x1], 1 }

// kernel: _lambda_.3
= control target key start
LH: loop header
LB: loop body
LE: loop exit
PB: predicated region body
PF: predicated region fallthrough
CT: control target
= control target key end

     0   :  { %s947_s6 = smov 0   ;;  %s1096_s0 = inlined_call_operand.vmem [shape: bf16[2,18,18,128], index: 0, kind: input, shape index: {}]   ;;  %s1097_s1 = inlined_call_operand.vmem [shape: f32[2,8,8,128], index: 1, kind: output, shape index: {}]  }
   0x1 LB: > { %s754_s7 = sadd.s32 4294967295, %s935_s6   ;;  %p758_p0 = scmp.ge.s32.totalorder %s935_s6, 1  ;;  %s935_s6 = sphi %s947_s6, %s11_s6  }
   0x2   : > { %p87_p1 = scmp.lt.s32.totalorder %s935_s6, 3 }
   0x4   : > { %p88_p2 = pnand %p758_p0, %p87_p1 }
   0x5   : > { %p107_p3 = scmp.lt.s32.totalorder (!%p88_p2), %s754_s7, 1  ;;  %vm180_vm0 = vcmask (!%p88_p2), 1040384   ;;  %vm182_vm1 = vcmask (!%p88_p2), 1041408   ;;  %vm184_vm2 = vcmask (!%p88_p2), 1042432   ;;  %vm186_vm3 = vcmask (!%p88_p2), 1043456  }
   0x6   : > { %91 = sbr.rel (%p88_p2) target bundleno = 102 (0x66), region = 24  ;;  %vm188_vm4 = vcmask (!%p88_p2), 1044480   ;;  %vm190_vm5 = vcmask (!%p88_p2), 1045504   ;;  %vm192_vm6 = vcmask (!%p88_p2), 1046528  }
   0xd   : > { %s1099_s7 = smov (!%p107_p3, %s754_s7), 1 }
   0xe   : > { %s920_s8 = smul.u32 216, %s1099_s7  ;;  %s840_s12 = sshll.u32 %s1099_s7, 6 }
   0xf   : > { %s998_s15 = scalar_lea.vmem %s1097_s1, %s840_s12 }
  0x10   : > { %s961_s11 = scalar_lea.vmem %s1096_s0, %s920_s8 }
  0x11   : > { %v842_v0 = vld [vmem:[%s961_s11] sm:$0xff]   ;;  %v119_v1 = vld [vmem:[%s961_s11 + $0x8] sm:$0x1]  ;;  %v762_v2 = vld [vmem:[%s961_s11 + $0xc] sm:$0xff]  }
  0x12   : > { %v843_v3 = vunpack.c.l.bf16 %v842_v0  ;;  %v844_v4 = vunpack.c.h.bf16 %v842_v0  ;;  %v122_v5 = vunpack.c.l.bf16 %v119_v1  ;;  %v764_v6 = vld [vmem:[%s961_s11 + $0x14] sm:$0x1]  ;;  %v127_v7 = vunpack.c.l.bf16 %v762_v2  ;;  %v905_v8 = vld [vmem:[%s961_s11 + $0x18] sm:$0xff]   ;;  %v767_v9 = vld [vmem:[%s961_s11 + $0x20] sm:$0x1] }
  0x13   : > { %v128_v10 = vunpack.c.h.bf16 %v762_v2  ;;  %v129_v11 = vunpack.c.l.bf16 %v764_v6  ;;  %v847_v12 = vunpack.c.l.bf16 %v905_v8  ;;  %v848_v13 = vunpack.c.h.bf16 %v905_v8  ;;  %v770_v14 = vld [vmem:[%s961_s11 + $0x20] sm:$0x1]  ;;  %v771_v15 = vld [vmem:[%s961_s11 + $0x24] sm:$0xff]   ;;  %v773_v16 = vld [vmem:[%s961_s11 + $0x2c] sm:$0x1] }
  0x14   : > { %v130_v17 = vmax.f32 %v843_v3, %v127_v7  ;;  %v139_v18 = vunpack.c.l.bf16 %v767_v9  ;;  %v200_v19 = vunpack.c.l.bf16 %v770_v14  ;;  %v205_v20 = vunpack.c.l.bf16 %v771_v15  ;;  %v973_v21 = vld [vmem:[%s961_s11 + $0x30] sm:$0xff]   ;;  %v776_v26 = vld [vmem:[%s961_s11 + $0x38] sm:$0x1]  ;;  %v781_v48 = vld [vmem:[%s961_s11 + $0x3c] sm:$0xff]  }
  0x15   : > { %v131_v22 = vmax.f32 %v844_v4, %v128_v10  ;;  %v132_v23 = vmax.f32 %v122_v5, %v129_v11  ;;  %v206_v24 = vunpack.c.h.bf16 %v771_v15  ;;  %v207_v25 = vunpack.c.l.bf16 %v773_v16  ;;  %v981_v39 = vld [vmem:[%s961_s11 + $0x38] sm:$0x1] }
  0x16   : > { %v140_v27 = vmax.f32 %v130_v17, %v847_v12  ;;  %v208_v28 = vmax.f32 %v847_v12, %v205_v20  ;;  %v855_v29 = vunpack.c.l.bf16 %v973_v21  ;;  %v856_v30 = vunpack.c.h.bf16 %v973_v21  ;;  %v783_v12 = vld [vmem:[%s961_s11 + $0x44] sm:$0x1] }
  0x17   : > { %v141_v31 = vmax.f32 %v131_v22, %v848_v13  ;;  %v142_v32 = vmax.f32 %v132_v23, %v139_v18  ;;  %v209_v33 = vmax.f32 %v848_v13, %v206_v24  ;;  %v210_v34 = vmax.f32 %v200_v19, %v207_v25  ;;  %v909_v18 = vld [vmem:[%s961_s11 + $0x48] sm:$0xff]  }
  0x18   : > { %v144_v35 = vrot.slane %v140_v27, 1  ;;  %v147_v36 = vrot.slane %v140_v27, 2  ;;  %v217_v37 = vunpack.c.l.bf16 %v776_v26  ;;  %v218_v38 = vmax.f32 %v208_v28, %v855_v29  ;;  %v786_v28 = vld [vmem:[%s961_s11 + $0x50] sm:$0x1] }
  0x19   : > { %v151_v40 = vrot.slane %v141_v31, 2  ;;  %v154_v41 = vrot.slane %v141_v31, 1  ;;  %v159_v42 = vrot.slane %v142_v32, 2  ;;  %v219_v43 = vmax.f32 %v209_v33, %v856_v30 }
  0x1a   : > { %v146_v44 = vmax.f32 %v140_v27, %v144_v35  ;;  %v220_v45 = vmax.f32 %v210_v34, %v217_v37  ;;  %v222_v46 = vrot.slane %v218_v38, 1  ;;  %v225_v47 = vrot.slane %v218_v38, 2 }
  0x1b   : > { %v156_v49 = vmax.f32 %v141_v31, %v154_v41  ;;  %v229_v50 = vrot.slane %v219_v43, 2  ;;  %v232_v51 = vrot.slane %v219_v43, 1  ;;  %v272_v52 = vunpack.c.l.bf16 %v981_v39  ;;  %v790_v31 = vld [vmem:[%s961_s11 + $0x50] sm:$0x1] }
  0x1c   : > { %v149_v53 = vmax.f32 %v146_v44, %v147_v36  ;;  %v153_v54 = vmax.f32 %v146_v44, %v151_v40  ;;  %v224_v55 = vmax.f32 %v218_v38, %v222_v46  ;;  %v237_v56 = vrot.slane %v220_v45, 2  ;;  %v791_v36 = vld [vmem:[%s961_s11 + $0x54] sm:$0xff]   ;;  %v793_v44 = vld [vmem:[%s961_s11 + $0x5c] sm:$0x1] }
  0x1d   : > { %v157_v57 = vmax.f32 %v156_v49, %v151_v40  ;;  %v161_v58 = vmax.f32 %v156_v49, %v159_v42  ;;  %v234_v59 = vmax.f32 %v219_v43, %v232_v51  ;;  %v277_v60 = vunpack.c.l.bf16 %v781_v48 }
  0x1e   : > { %v163_v61 = vrot.slane %v149_v53, 1  ;;  %v165_v62 = vrot.slane %v149_v53, 2  ;;  %v168_v63 = vrot.slane %v153_v54, 3  ;;  %v227_v0 = vmax.f32 %v224_v55, %v225_v47  ;;  %v1018_v47 = vld [vmem:[%s961_s11 + $0x60] sm:$0xff]  }
  0x1f   : > { %v171_v1 = vrot.slane %v157_v57, 4  ;;  %v173_v2 = vrot.slane %v157_v57, 5  ;;  %v175_v3 = vrot.slane %v157_v57, 6  ;;  %v178_v4 = vrot.slane %v161_v58, 7  ;;  %v800_v57 = vld [vmem:[%s961_s11 + $0x68] sm:$0x1] }
  0x20   : > { %v181_v5 = vsel %vm180_vm0, %v149_v53, %v163_v61  ;;  %v231_v6 = vmax.f32 %v224_v55, %v229_v50  ;;  %v235_v7 = vmax.f32 %v234_v59, %v229_v50  ;;  %v239_v8 = vmax.f32 %v234_v59, %v237_v56 }
  0x21   : > { %v183_v9 = vsel %vm182_vm1, %v181_v5, %v165_v62  ;;  %v241_v10 = vrot.slane %v227_v0, 1  ;;  %v243_v11 = vrot.slane %v227_v0, 2  ;;  %v278_v13 = vunpack.c.h.bf16 %v781_v48 }
  0x22   : > { %v185_v14 = vsel %vm184_vm2, %v183_v9, %v168_v63  ;;  %v246_v15 = vrot.slane %v231_v6, 3  ;;  %v249_v16 = vrot.slane %v235_v7, 4  ;;  %v251_v17 = vrot.slane %v235_v7, 5 }
  0x23   : > { %v187_v19 = vsel %vm186_vm3, %v185_v14, %v171_v1  ;;  %v253_v20 = vrot.slane %v235_v7, 6  ;;  %v256_v22 = vrot.slane %v239_v8, 7  ;;  %v258_v23 = vsel %vm180_vm0, %v227_v0, %v241_v10  ;;  %v801_v14 = vld [vmem:[%s961_s11 + $0x6c] sm:$0xff]  }
  0x24   : > { %v189_v24 = vsel %vm188_vm4, %v187_v19, %v173_v2  ;;  %v259_v25 = vsel %vm182_vm1, %v258_v23, %v243_v11  ;;  %v279_v26 = vunpack.c.l.bf16 %v783_v12  ;;  %v280_v27 = vmax.f32 %v855_v29, %v277_v60 }
  0x25   : > { %v191_v32 = vsel %vm190_vm5, %v189_v24, %v175_v3  ;;  %v260_v33 = vsel %vm184_vm2, %v259_v25, %v246_v15  ;;  %v281_v34 = vmax.f32 %v856_v30, %v278_v13  ;;  %v863_v35 = vunpack.c.l.bf16 %v909_v18  ;;  %v803_v24 = vld [vmem:[%s961_s11 + $0x74] sm:$0x1] }
  0x26   : > { %v193_v37 = vsel %vm192_vm6, %v191_v32, %v178_v4  ;;  %v261_v38 = vsel %vm186_vm3, %v260_v33, %v249_v16  ;;  %v282_v39 = vmax.f32 %v272_v52, %v279_v26  ;;  %v864_v40 = vunpack.c.h.bf16 %v909_v18  ;;  %v796_v52 = vld [vmem:[%s961_s11 + $0x68] sm:$0x1] }
  0x27   : > { %194 = vst [vmem:[%s998_s15] sm:$0xff] %v193_v37  ;;  %v262_v29 = vsel %vm188_vm4, %v261_v38, %v251_v17  ;;  %v289_v41 = vunpack.c.l.bf16 %v786_v28  ;;  %v290_v42 = vmax.f32 %v280_v27, %v863_v35  ;;  %v344_v43 = vunpack.c.l.bf16 %v790_v31 }
  0x28   : > { %v263_v21 = vsel %vm190_vm5, %v262_v29, %v253_v20  ;;  %v291_v30 = vmax.f32 %v281_v34, %v864_v40  ;;  %v349_v45 = vunpack.c.l.bf16 %v791_v36  ;;  %v350_v46 = vunpack.c.h.bf16 %v791_v36 }
  0x29   : > { %v264_v48 = vsel %vm192_vm6, %v263_v21, %v256_v22  ;;  %v292_v49 = vmax.f32 %v282_v39, %v289_v41  ;;  %v294_v50 = vrot.slane %v290_v42, 1  ;;  %v297_v51 = vrot.slane %v290_v42, 2  ;;  %v913_v39 = vld [vmem:[%s961_s11 + $0x78] sm:$0xff]  }
  0x2a   : > { %777 = vst [vmem:[%s998_s15 + $0x8] sm:$0xff] %v264_v48  ;;  %v301_v53 = vrot.slane %v291_v30, 2  ;;  %v304_v54 = vrot.slane %v291_v30, 1  ;;  %v351_v55 = vunpack.c.l.bf16 %v793_v44  ;;  %v352_v56 = vmax.f32 %v863_v35, %v349_v45  ;;  %v806_v45 = vld [vmem:[%s961_s11 + $0x80] sm:$0x1] }
  0x2b   : > { %v296_v58 = vmax.f32 %v290_v42, %v294_v50  ;;  %v309_v59 = vrot.slane %v292_v49, 2  ;;  %v353_v60 = vmax.f32 %v864_v40, %v350_v46  ;;  %v871_v61 = vunpack.c.l.bf16 %v1018_v47  ;;  %v810_v50 = vld [vmem:[%s961_s11 + $0x80] sm:$0x1] }
  0x2c   : > { %v306_v62 = vmax.f32 %v291_v30, %v304_v54  ;;  %v354_v63 = vmax.f32 %v344_v43, %v351_v55  ;;  %v872_v0 = vunpack.c.h.bf16 %v1018_v47  ;;  %v361_v1 = vunpack.c.l.bf16 %v796_v52 }
  0x2d   : > { %v299_v2 = vmax.f32 %v296_v58, %v297_v51  ;;  %v303_v3 = vmax.f32 %v296_v58, %v301_v53  ;;  %v362_v4 = vmax.f32 %v352_v56, %v871_v61  ;;  %v416_v5 = vunpack.c.l.bf16 %v800_v57  ;;  %v811_v51 = vld [vmem:[%s961_s11 + $0x84] sm:$0xff]  }
  0x2e   : > { %v307_v6 = vmax.f32 %v306_v62, %v301_v53  ;;  %v311_v7 = vmax.f32 %v306_v62, %v309_v59  ;;  %v363_v8 = vmax.f32 %v353_v60, %v872_v0  ;;  %v364_v9 = vmax.f32 %v354_v63, %v361_v1  ;;  %v813_v60 = vld [vmem:[%s961_s11 + $0x8c] sm:$0x1] }
  0x2f   : > { %v313_v10 = vrot.slane %v299_v2, 1  ;;  %v315_v11 = vrot.slane %v299_v2, 2  ;;  %v318_v12 = vrot.slane %v303_v3, 3  ;;  %v366_v13 = vrot.slane %v362_v4, 1 }
  0x30   : > { %v321_v15 = vrot.slane %v307_v6, 4  ;;  %v323_v16 = vrot.slane %v307_v6, 5  ;;  %v325_v17 = vrot.slane %v307_v6, 6  ;;  %v328_v18 = vrot.slane %v311_v7, 7 }
  0x31   : > { %v330_v19 = vsel %vm180_vm0, %v299_v2, %v313_v10  ;;  %v368_v20 = vmax.f32 %v362_v4, %v366_v13  ;;  %v369_v22 = vrot.slane %v362_v4, 2  ;;  %v373_v23 = vrot.slane %v363_v8, 2  ;;  %v821_v10 = vld [vmem:[%s961_s11 + $0x9c] sm:$0xff]  }
  0x32   : > { %v331_v25 = vsel %vm182_vm1, %v330_v19, %v315_v11  ;;  %v376_v26 = vrot.slane %v363_v8, 1  ;;  %v381_v27 = vrot.slane %v364_v9, 2  ;;  %v421_v28 = vunpack.c.l.bf16 %v801_v14  ;;  %v915_v9 = vld [vmem:[%s961_s11 + $0x90] sm:$0xff]  }
  0x33   : > { %v332_v31 = vsel %vm184_vm2, %v331_v25, %v318_v12  ;;  %v371_v32 = vmax.f32 %v368_v20, %v369_v22  ;;  %v375_v33 = vmax.f32 %v368_v20, %v373_v23  ;;  %v422_v34 = vunpack.c.h.bf16 %v801_v14 }
  0x34   : > { %v333_v35 = vsel %vm186_vm3, %v332_v31, %v321_v15  ;;  %v378_v36 = vmax.f32 %v363_v8, %v376_v26  ;;  %v423_v37 = vunpack.c.l.bf16 %v803_v24  ;;  %v424_v38 = vmax.f32 %v871_v61, %v421_v28  ;;  %v816_v15 = vld [vmem:[%s961_s11 + $0x98] sm:$0x1] }
  0x35   : > { %v334_v40 = vsel %vm188_vm4, %v333_v35, %v323_v16  ;;  %v385_v29 = vrot.slane %v371_v32, 1  ;;  %v387_v41 = vrot.slane %v371_v32, 2  ;;  %v390_v42 = vrot.slane %v375_v33, 3  ;;  %v820_v16 = vld [vmem:[%s961_s11 + $0x98] sm:$0x1] }
  0x36   : > { %v335_v43 = vsel %vm190_vm5, %v334_v40, %v325_v17  ;;  %v379_v44 = vmax.f32 %v378_v36, %v373_v23  ;;  %v383_v21 = vmax.f32 %v378_v36, %v381_v27  ;;  %v425_v30 = vmax.f32 %v872_v0, %v422_v34 }
  0x37   : > { %v336_v46 = vsel %vm192_vm6, %v335_v43, %v328_v18  ;;  %v402_v47 = vsel %vm180_vm0, %v371_v32, %v385_v29  ;;  %v426_v48 = vmax.f32 %v416_v5, %v423_v37  ;;  %v879_v49 = vunpack.c.l.bf16 %v913_v39  ;;  %v823_v43 = vld [vmem:[%s961_s11 + $0xa4] sm:$0x1] }
  0x38   : > { %787 = vst [vmem:[%s998_s15 + $0x10] sm:$0xff] %v336_v46  ;;  %v393_v52 = vrot.slane %v379_v44, 4  ;;  %v395_v53 = vrot.slane %v379_v44, 5  ;;  %v397_v54 = vrot.slane %v379_v44, 6  ;;  %v400_v55 = vrot.slane %v383_v21, 7  ;;  %v917_v46 = vld [vmem:[%s961_s11 + $0xa8] sm:$0xff]  }
  0x39   : > { %v403_v56 = vsel %vm182_vm1, %v402_v47, %v387_v41  ;;  %v880_v57 = vunpack.c.h.bf16 %v913_v39  ;;  %v433_v58 = vunpack.c.l.bf16 %v806_v45  ;;  %v434_v59 = vmax.f32 %v424_v38, %v879_v49 }
  0x3a   : > { %v404_v61 = vsel %vm184_vm2, %v403_v56, %v390_v42  ;;  %v488_v62 = vunpack.c.l.bf16 %v810_v50  ;;  %v493_v63 = vunpack.c.l.bf16 %v811_v51  ;;  %v494_v0 = vunpack.c.h.bf16 %v811_v51 }
  0x3b   : > { %v405_v1 = vsel %vm186_vm3, %v404_v61, %v393_v52  ;;  %v435_v2 = vmax.f32 %v425_v30, %v880_v57  ;;  %v436_v3 = vmax.f32 %v426_v48, %v433_v58  ;;  %v438_v4 = vrot.slane %v434_v59, 1 }
  0x3c   : > { %v406_v5 = vsel %vm188_vm4, %v405_v1, %v395_v53  ;;  %v441_v6 = vrot.slane %v434_v59, 2  ;;  %v495_v7 = vunpack.c.l.bf16 %v813_v60  ;;  %v496_v8 = vmax.f32 %v879_v49, %v493_v63 }
  0x3d   : > { %v407_v11 = vsel %vm190_vm5, %v406_v5, %v397_v54  ;;  %v440_v12 = vmax.f32 %v434_v59, %v438_v4  ;;  %v445_v13 = vrot.slane %v435_v2, 2  ;;  %v448_v14 = vrot.slane %v435_v2, 1 }
  0x3e   : > { %v408_v17 = vsel %vm192_vm6, %v407_v11, %v400_v55  ;;  %v453_v18 = vrot.slane %v436_v3, 2  ;;  %v497_v19 = vmax.f32 %v880_v57, %v494_v0  ;;  %v498_v20 = vmax.f32 %v488_v62, %v495_v7  ;;  %v826_v3 = vld [vmem:[%s961_s11 + $0xb0] sm:$0x1] }
  0x3f   : > { %797 = vst [vmem:[%s998_s15 + $0x18] sm:$0xff] %v408_v17  ;;  %v443_v22 = vmax.f32 %v440_v12, %v441_v6  ;;  %v447_v23 = vmax.f32 %v440_v12, %v445_v13  ;;  %v450_v24 = vmax.f32 %v435_v2, %v448_v14  ;;  %v887_v25 = vunpack.c.l.bf16 %v915_v9 }
  0x40   : > { %v888_v26 = vunpack.c.h.bf16 %v915_v9  ;;  %v505_v27 = vunpack.c.l.bf16 %v816_v15  ;;  %v560_v28 = vunpack.c.l.bf16 %v820_v16  ;;  %v565_v31 = vunpack.c.l.bf16 %v821_v10  ;;  %v831_v9 = vld [vmem:[%s961_s11 + $0xb4] sm:$0xff]  }
  0x41   : > { %v451_v32 = vmax.f32 %v450_v24, %v445_v13  ;;  %v455_v33 = vmax.f32 %v450_v24, %v453_v18  ;;  %v457_v34 = vrot.slane %v443_v22, 1  ;;  %v459_v35 = vrot.slane %v443_v22, 2  ;;  %v833_v18 = vld [vmem:[%s961_s11 + $0xbc] sm:$0x1] }
  0x42   : > { %v462_v36 = vrot.slane %v447_v23, 3  ;;  %v506_v37 = vmax.f32 %v496_v8, %v887_v25  ;;  %v507_v38 = vmax.f32 %v497_v19, %v888_v26  ;;  %v508_v39 = vmax.f32 %v498_v20, %v505_v27  ;;  %v830_v8 = vld [vmem:[%s961_s11 + $0xb0] sm:$0x1] }
  0x43   : > { %v465_v40 = vrot.slane %v451_v32, 4  ;;  %v467_v29 = vrot.slane %v451_v32, 5  ;;  %v469_v41 = vrot.slane %v451_v32, 6  ;;  %v472_v42 = vrot.slane %v455_v33, 7 }
  0x44   : > { %v474_v44 = vsel %vm180_vm0, %v443_v22, %v457_v34  ;;  %v510_v21 = vrot.slane %v506_v37, 1  ;;  %v513_v30 = vrot.slane %v506_v37, 2  ;;  %v517_v45 = vrot.slane %v507_v38, 2  ;;  %v919_v34 = vld [vmem:[%s961_s11 + $0xc0] sm:$0xff]  }
  0x45   : > { %v475_v47 = vsel %vm182_vm1, %v474_v44, %v459_v35  ;;  %v520_v48 = vrot.slane %v507_v38, 1  ;;  %v525_v49 = vrot.slane %v508_v39, 2  ;;  %v566_v50 = vunpack.c.h.bf16 %v821_v10  ;;  %v836_v39 = vld [vmem:[%s961_s11 + $0xc8] sm:$0x1] }
  0x46   : > { %v476_v51 = vsel %vm184_vm2, %v475_v47, %v462_v36  ;;  %v512_v52 = vmax.f32 %v506_v37, %v510_v21  ;;  %v567_v53 = vunpack.c.l.bf16 %v823_v43  ;;  %v568_v54 = vmax.f32 %v887_v25, %v565_v31 }
  0x47   : > { %v477_v55 = vsel %vm186_vm3, %v476_v51, %v465_v40  ;;  %v522_v56 = vmax.f32 %v507_v38, %v520_v48  ;;  %v569_v57 = vmax.f32 %v888_v26, %v566_v50  ;;  %v895_v58 = vunpack.c.l.bf16 %v917_v46 }
  0x48   : > { %v478_v59 = vsel %vm188_vm4, %v477_v55, %v467_v29  ;;  %v515_v60 = vmax.f32 %v512_v52, %v513_v30  ;;  %v519_v61 = vmax.f32 %v512_v52, %v517_v45  ;;  %v570_v62 = vmax.f32 %v560_v28, %v567_v53 }
  0x49   : > { %v479_v63 = vsel %vm190_vm5, %v478_v59, %v469_v41  ;;  %v523_v0 = vmax.f32 %v522_v56, %v517_v45  ;;  %v527_v1 = vmax.f32 %v522_v56, %v525_v49  ;;  %v896_v2 = vunpack.c.h.bf16 %v917_v46 }
  0x4a   : > { %v480_v4 = vsel %vm192_vm6, %v479_v63, %v472_v42  ;;  %v529_v5 = vrot.slane %v515_v60, 1  ;;  %v531_v6 = vrot.slane %v515_v60, 2  ;;  %v534_v7 = vrot.slane %v519_v61, 3 }
  0x4b   : > { %807 = vst [vmem:[%s998_s15 + $0x20] sm:$0xff] %v480_v4  ;;  %v537_v10 = vrot.slane %v523_v0, 4  ;;  %v539_v11 = vrot.slane %v523_v0, 5  ;;  %v541_v12 = vrot.slane %v523_v0, 6  ;;  %v544_v13 = vrot.slane %v527_v1, 7 }
  0x4c   : > { %v546_v14 = vsel %vm180_vm0, %v515_v60, %v529_v5  ;;  %v577_v15 = vunpack.c.l.bf16 %v826_v3  ;;  %v578_v16 = vmax.f32 %v568_v54, %v895_v58  ;;  %v579_v17 = vmax.f32 %v569_v57, %v896_v2 }
  0x4d   : > { %v547_v19 = vsel %vm182_vm1, %v546_v14, %v531_v6  ;;  %v632_v20 = vunpack.c.l.bf16 %v830_v8  ;;  %v637_v22 = vunpack.c.l.bf16 %v831_v9  ;;  %v638_v23 = vunpack.c.h.bf16 %v831_v9 }
  0x4e   : > { %v548_v24 = vsel %vm184_vm2, %v547_v19, %v534_v7  ;;  %v580_v25 = vmax.f32 %v570_v62, %v577_v15  ;;  %v582_v26 = vrot.slane %v578_v16, 1  ;;  %v585_v27 = vrot.slane %v578_v16, 2 }
  0x4f   : > { %v549_v28 = vsel %vm186_vm3, %v548_v24, %v537_v10  ;;  %v589_v31 = vrot.slane %v579_v17, 2  ;;  %v592_v32 = vrot.slane %v579_v17, 1  ;;  %v639_v33 = vunpack.c.l.bf16 %v833_v18 }
  0x50   : > { %v550_v35 = vsel %vm188_vm4, %v549_v28, %v539_v11  ;;  %v584_v36 = vmax.f32 %v578_v16, %v582_v26  ;;  %v597_v37 = vrot.slane %v580_v25, 2  ;;  %v640_v38 = vmax.f32 %v895_v58, %v637_v22 }
  0x51   : > { %v551_v40 = vsel %vm190_vm5, %v550_v35, %v541_v12  ;;  %v594_v29 = vmax.f32 %v579_v17, %v592_v32  ;;  %v641_v41 = vmax.f32 %v896_v2, %v638_v23  ;;  %v642_v42 = vmax.f32 %v632_v20, %v639_v33 }
  0x52   : > { %v552_v43 = vsel %vm192_vm6, %v551_v40, %v544_v13  ;;  %v587_v44 = vmax.f32 %v584_v36, %v585_v27  ;;  %v591_v21 = vmax.f32 %v584_v36, %v589_v31  ;;  %v903_v30 = vunpack.c.l.bf16 %v919_v34 }
  0x53   : > { %817 = vst [vmem:[%s998_s15 + $0x28] sm:$0xff] %v552_v43  ;;  %v595_v45 = vmax.f32 %v594_v29, %v589_v31  ;;  %v599_v46 = vmax.f32 %v594_v29, %v597_v37  ;;  %v904_v47 = vunpack.c.h.bf16 %v919_v34  ;;  %v649_v48 = vunpack.c.l.bf16 %v836_v39 }
  0x54   : > { %v601_v49 = vrot.slane %v587_v44, 1  ;;  %v603_v50 = vrot.slane %v587_v44, 2  ;;  %v606_v51 = vrot.slane %v591_v21, 3  ;;  %v650_v52 = vmax.f32 %v640_v38, %v903_v30 }
  0x55   : > { %v609_v53 = vrot.slane %v595_v45, 4  ;;  %v611_v54 = vrot.slane %v595_v45, 5  ;;  %v651_v56 = vmax.f32 %v641_v41, %v904_v47  ;;  %v652_v57 = vmax.f32 %v642_v42, %v649_v48 }
  0x56   : > { %v618_v55 = vsel %vm180_vm0, %v587_v44, %v601_v49  ;;  %v654_v58 = vrot.slane %v650_v52, 1  ;;  %v613_v59 = vrot.slane %v595_v45, 6  ;;  %v616_v60 = vrot.slane %v599_v46, 7 }
  0x57   : > { %v619_v61 = vsel %vm182_vm1, %v618_v55, %v603_v50  ;;  %v657_v62 = vrot.slane %v650_v52, 2  ;;  %v661_v1 = vrot.slane %v651_v56, 2  ;;  %v664_v2 = vrot.slane %v651_v56, 1 }
  0x58   : > { %v620_v63 = vsel %vm184_vm2, %v619_v61, %v606_v51  ;;  %v656_v0 = vmax.f32 %v650_v52, %v654_v58  ;;  %v669_v4 = vrot.slane %v652_v57, 2 }
  0x59   : > { %v621_v3 = vsel %vm186_vm3, %v620_v63, %v609_v53  ;;  %v666_v8 = vmax.f32 %v651_v56, %v664_v2 }
  0x5a   : > { %v622_v5 = vsel %vm188_vm4, %v621_v3, %v611_v54  ;;  %v659_v6 = vmax.f32 %v656_v0, %v657_v62  ;;  %v663_v7 = vmax.f32 %v656_v0, %v661_v1 }
  0x5b   : > { %v623_v9 = vsel %vm190_vm5, %v622_v5, %v613_v59  ;;  %v667_v11 = vmax.f32 %v666_v8, %v661_v1  ;;  %v671_v13 = vmax.f32 %v666_v8, %v669_v4 }
  0x5c   : > { %v624_v10 = vsel %vm192_vm6, %v623_v9, %v616_v60  ;;  %v673_v12 = vrot.slane %v659_v6, 1  ;;  %v675_v14 = vrot.slane %v659_v6, 2  ;;  %v678_v15 = vrot.slane %v663_v7, 3 }
  0x5d   : > { %827 = vst [vmem:[%s998_s15 + $0x30] sm:$0xff] %v624_v10  ;;  %v681_v16 = vrot.slane %v667_v11, 4  ;;  %v683_v17 = vrot.slane %v667_v11, 5  ;;  %v685_v19 = vrot.slane %v667_v11, 6  ;;  %v688_v22 = vrot.slane %v671_v13, 7 }
  0x5e   : > { %v690_v18 = vsel %vm180_vm0, %v659_v6, %v673_v12 }
  0x5f   : > { %v691_v20 = vsel %vm182_vm1, %v690_v18, %v675_v14 }
  0x60   : > { %v692_v23 = vsel %vm184_vm2, %v691_v20, %v678_v15 }
  0x61   : > { %v693_v24 = vsel %vm186_vm3, %v692_v23, %v681_v16 }
  0x62   : > { %v694_v25 = vsel %vm188_vm4, %v693_v24, %v683_v17 }
  0x63   : > { %v695_v26 = vsel %vm190_vm5, %v694_v25, %v685_v19 }
  0x64   : > { %v696_v27 = vsel %vm192_vm6, %v695_v26, %v688_v22 }
  0x65   : > { %837 = vst [vmem:[%s998_s15 + $0x38] sm:$0xff] %v696_v27 }
  0x66 PF: > { %s11_s6 = sadd.s32 1, %s935_s6  }
  0x67   : > { %p8_p4 = scmp.ge.s32.totalorder %s11_s6, 4  }
  0x69   :  { %10 = sbr.rel (!%p8_p4) target bundleno = 1 (0x1), region = 77 }

</bundles_post_ra>
